<compile_context>
chip_gen: v6e
topology: v6e:2x2x1
jax: 0.10.0
libtpu: 0.0.40
codegen_flags: <defaults>
</compile_context>

<pallas_src>
import numpy as np
import jax
import jax.numpy as jnp
from jax.experimental import pallas as pl
from jax.experimental.pallas import tpu as pltpu


def _round_up(a, b):
    return ((a + b - 1) // b) * b


# ----------------------------- Pallas kernel --------------------------------
def _d_model_cnn_kernel(x_ref, y_ref, w1_ref, b1_ref, w2_ref, b2_ref,
                        w3_ref, b3_ref, weff_ref, bl_ref, out_ref):
    """Per-batch-tile forward.

    x_ref: (TB, Lx) VMEM, y_ref: (TB, Ly) VMEM,
    conv weights/biases: flat 1-D f32 SMEM,
    weff_ref: (8, L-6) VMEM (AvgPool+Flatten+Linear folded, tail zero-masked),
    bl_ref: (1,) SMEM, out_ref: (1, TB) VMEM (lane-dense, batch on lane axis).
    """
    tb = x_ref.shape[0]
    L = x_ref.shape[1] + y_ref.shape[1]

    # torch.cat((x, y), dim=1) assembled in-register (no HBM round trip).
    h0 = jnp.concatenate(
        [x_ref[...].astype(jnp.float32), y_ref[...].astype(jnp.float32)], axis=1)

    def conv_relu(hs, w_ref, b_ref, c_in, c_out, l_out):
        # Hoist the 3 tap-shifted views of each input channel once and reuse them
        # for every output channel.
        taps = [[h[:, k:k + l_out] for k in range(3)] for h in hs]
        outs = []
        for co in range(c_out):
            # init accumulator with first product + bias (no zeros slab)
            acc = w_ref[co * c_in * 3] * taps[0][0] + b_ref[co]
            for ci in range(c_in):
                for k in range(3):
                    if ci == 0 and k == 0:
                        continue
                    acc = acc + w_ref[(co * c_in + ci) * 3 + k] * taps[ci][k]
            outs.append(jnp.maximum(acc, 0.0))
        return outs

    h1 = conv_relu([h0], w1_ref, b1_ref, 1, 2, L - 2)   # Conv1d(1->2,k=3) + ReLU
    h2 = conv_relu(h1, w2_ref, b2_ref, 2, 4, L - 4)     # Conv1d(2->4,k=3) + ReLU
    h3 = conv_relu(h2, w3_ref, b3_ref, 4, 8, L - 6)     # Conv1d(4->8,k=3) + ReLU

    # AvgPool1d(2) + Flatten + Linear folded into w_eff: accumulate one (TB, L3)
    # slab on the VPU, then a single cross-lane reduction.
    w_eff = weff_ref[...]
    acc_vec = h3[0] * w_eff[0][None, :]
    for co in range(1, 8):
        acc_vec = acc_vec + h3[co] * w_eff[co][None, :]
    r = jnp.sum(acc_vec, axis=1) + bl_ref[0]            # (TB,)
    out_ref[...] = r.reshape(1, tb).astype(out_ref.dtype)


# ------------------------------ JAX wrapper ----------------------------------
def d_model_cnn_forward(x, y, params):
    """x: (B, x_dim), y: (B, y_dim). Returns (B, 1)."""
    w1, b1, w2, b2, w3, b3, wl, bl = params
    x = jnp.asarray(x, jnp.float32)
    y = jnp.asarray(y, jnp.float32)
    B, Lx = x.shape
    Ly = y.shape[1]
    L = Lx + Ly
    assert L >= 7, "x_dim + y_dim must be >= 7 for three valid k=3 convolutions"
    L3 = L - 6                      # length after the three valid convs
    Lp = L3 // 2                    # AvgPool1d(kernel_size=2, stride=2)
    assert Lp >= 1, "post-conv length too short for AvgPool1d(2)"
    F_flat = 8 * Lp
    assert wl.shape == (1, F_flat) and bl.shape == (1,)

    # Batch tile: multiple of 8 sublanes, capped at 128 (keeps output blocks
    # lane-aligned and VMEM usage bounded on v7x's 64 MiB).
    if B <= 128:
        tb = _round_up(max(B, 1), 8)
    else:
        tb = 128
    Bp = _round_up(B, tb)
    grid = (Bp // tb,)
    if Bp != B:
        x = jnp.pad(x, ((0, Bp - B), (0, 0)))
        y = jnp.pad(y, ((0, Bp - B), (0, 0)))

    # Fold AvgPool(2) + Flatten into the linear weight (exact: avg-pool is linear).
    # w_eff[c, l] = 0.5 * wl[0, c*Lp + l//2] for l < 2*Lp, else 0 (dropped tail).
    lidx = np.arange(L3)
    pool_idx = np.minimum(lidx // 2, max(Lp - 1, 0))
    valid = (lidx < 2 * Lp).astype(np.float32)
    w_eff = jnp.stack(
        [0.5 * wl[0, c * Lp + pool_idx] * valid for c in range(8)], axis=0
    ).astype(jnp.float32)                                        # (8, L3)

    smem = pl.BlockSpec(memory_space=pltpu.MemorySpace.SMEM)

    out = pl.pallas_call(
        _d_model_cnn_kernel,
        out_shape=jax.ShapeDtypeStruct((1, Bp), jnp.float32),
        grid=grid,
        in_specs=[
            pl.BlockSpec((tb, Lx), lambda i: (i, 0)),    # x batch tile
            pl.BlockSpec((tb, Ly), lambda i: (i, 0)),    # y batch tile
            smem, smem,                                  # w1 flat (6,),  b1 (2,)
            smem, smem,                                  # w2 flat (24,), b2 (4,)
            smem, smem,                                  # w3 flat (96,), b3 (8,)
            pl.BlockSpec((8, L3), lambda i: (0, 0)),     # w_eff (grid-invariant)
            smem,                                        # bl (1,)
        ],
        out_specs=pl.BlockSpec((1, tb), lambda i: (0, i)),   # lane-dense output row
        compiler_params=pltpu.CompilerParams(
            dimension_semantics=("parallel",),
            vmem_limit_bytes=32 * 1024 * 1024),
    )(x, y,
      w1.reshape(-1).astype(jnp.float32), b1.astype(jnp.float32),
      w2.reshape(-1).astype(jnp.float32), b2.astype(jnp.float32),
      w3.reshape(-1).astype(jnp.float32), b3.astype(jnp.float32),
      w_eff, bl.astype(jnp.float32))

    return out[0, :B].reshape(B, 1)


# ---------------------------- Parameter init ---------------------------------
def init_params(key, input_dim):
    L3 = input_dim - 6
    Lp = L3 // 2
    F_flat = 8 * Lp

    def unif(k, shape, fan_in):
        bound = 1.0 / np.sqrt(fan_in)
        return jax.random.uniform(k, shape, jnp.float32, -bound, bound)

    ks = jax.random.split(key, 8)
    w1 = unif(ks[0], (2, 1, 3), 1 * 3); b1 = unif(ks[1], (2,), 1 * 3)
    w2 = unif(ks[2], (4, 2, 3), 2 * 3); b2 = unif(ks[3], (4,), 2 * 3)
    w3 = unif(ks[4], (8, 4, 3), 4 * 3); b3 = unif(ks[5], (8,), 4 * 3)
    wl = unif(ks[6], (1, F_flat), F_flat); bl = unif(ks[7], (1,), F_flat)
    return (w1, b1, w2, b2, w3, b3, wl, bl)


# --------------------------- NumPy reference ----------------------------------
def reference_forward(x, y, params):
    w1, b1, w2, b2, w3, b3, wl, bl = [np.asarray(p, np.float32) for p in params]
    h = np.concatenate([np.asarray(x), np.asarray(y)], axis=1)[:, None, :]  # (B,1,L)

    def conv(h, w, b):
        B, Cin, L = h.shape
        Cout, Lo = w.shape[0], L - 2
        out = np.zeros((B, Cout, Lo), np.float32)
        for co in range(Cout):
            out[:, co, :] = b[co]
            for ci in range(Cin):
                for k in range(3):
                    out[:, co, :] += w[co, ci, k] * h[:, ci, k:k + Lo]
        return out

    h = np.maximum(conv(h, w1, b1), 0.0)
    h = np.maximum(conv(h, w2, b2), 0.0)
    h = np.maximum(conv(h, w3, b3), 0.0)
    B, C, L3 = h.shape
    Lp = L3 // 2
    pooled = h[:, :, :2 * Lp].reshape(B, C, Lp, 2).mean(-1)
    flat = pooled.reshape(B, C * Lp)
    return flat @ wl.T + bl


# --------------------------------- main ---------------------------------------
if __name__ == "__main__":
    B, x_dim, y_dim = 2, 10, 8          # input_dim = 18 -> conv lens 16,14,12 -> pool 6 -> flat 48
    key = jax.random.PRNGKey(0)
    kx, ky, kp = jax.random.split(key, 3)
    x = jax.random.normal(kx, (B, x_dim), jnp.float32)
    y = jax.random.normal(ky, (B, y_dim), jnp.float32)
    params = init_params(kp, x_dim + y_dim)

    out = d_model_cnn_forward(x, y, params)
    out = jax.block_until_ready(out)

    ref = reference_forward(x, y, params)
    np.testing.assert_allclose(np.asarray(out), ref, rtol=1e-4, atol=1e-4)
    print("KERNEL_OK")
</pallas_src>

<mosaic_0001>
module attributes {stable_mosaic.version = 11 : i64} {
  func.func @_d_model_cnn_kernel(%arg0: i32, %arg1: memref<8x10xf32, #tpu.memory_space<vmem>>, %arg2: memref<8x8xf32, #tpu.memory_space<vmem>>, %arg3: memref<6xf32, #tpu.memory_space<smem>>, %arg4: memref<2xf32, #tpu.memory_space<smem>>, %arg5: memref<24xf32, #tpu.memory_space<smem>>, %arg6: memref<4xf32, #tpu.memory_space<smem>>, %arg7: memref<96xf32, #tpu.memory_space<smem>>, %arg8: memref<8xf32, #tpu.memory_space<smem>>, %arg9: memref<8x12xf32, #tpu.memory_space<vmem>>, %arg10: memref<1xf32, #tpu.memory_space<smem>>, %arg11: memref<1x8xf32, #tpu.memory_space<vmem>>) attributes {dimension_semantics = [#tpu.dimension_semantics<parallel>], iteration_bounds = array<i64: 1>, scalar_prefetch = 0 : i64, scratch_operands = 0 : i64, tpu.core_type = #tpu.core_type<tc>, window_params = [{transform_indices = @transform_0, window_bounds = array<i64: 8, 10>}, {transform_indices = @transform_1, window_bounds = array<i64: 8, 8>}, {transform_indices = @transform_2, window_bounds = array<i64: 6>}, {transform_indices = @transform_3, window_bounds = array<i64: 2>}, {transform_indices = @transform_4, window_bounds = array<i64: 24>}, {transform_indices = @transform_5, window_bounds = array<i64: 4>}, {transform_indices = @transform_6, window_bounds = array<i64: 96>}, {transform_indices = @transform_7, window_bounds = array<i64: 8>}, {pipeline_mode = #tpu.pipeline_mode<synchronous>, transform_indices = @transform_8, window_bounds = array<i64: 8, 12>}, {transform_indices = @transform_9, window_bounds = array<i64: 1>}, {transform_indices = @transform_10, window_bounds = array<i64: 1, 8>}]} {
    %c0 = arith.constant 0 : index
    %c0_0 = arith.constant 0 : index
    %0 = vector.load %arg1[%c0, %c0_0] : memref<8x10xf32, #tpu.memory_space<vmem>>, vector<8x10xf32>
    %c0_1 = arith.constant 0 : index
    %c0_2 = arith.constant 0 : index
    %1 = vector.load %arg2[%c0_1, %c0_2] : memref<8x8xf32, #tpu.memory_space<vmem>>, vector<8x8xf32>
    %2 = tpu.concatenate %0, %1 in 1 : vector<8x10xf32>, vector<8x8xf32> -> vector<8x18xf32>
    %3 = vector.extract_strided_slice %2 {offsets = [0, 0], sizes = [8, 16], strides = [1, 1]} : vector<8x18xf32> to vector<8x16xf32>
    %4 = vector.extract_strided_slice %2 {offsets = [0, 1], sizes = [8, 16], strides = [1, 1]} : vector<8x18xf32> to vector<8x16xf32>
    %5 = vector.extract_strided_slice %2 {offsets = [0, 2], sizes = [8, 16], strides = [1, 1]} : vector<8x18xf32> to vector<8x16xf32>
    %c0_3 = arith.constant 0 : index
    %6 = memref.load %arg3[%c0_3] : memref<6xf32, #tpu.memory_space<smem>>
    %7 = vector.broadcast %6 : f32 to vector<8x16xf32>
    %8 = arith.mulf %7, %3 : vector<8x16xf32>
    %c0_4 = arith.constant 0 : index
    %9 = memref.load %arg4[%c0_4] : memref<2xf32, #tpu.memory_space<smem>>
    %10 = vector.broadcast %9 : f32 to vector<8x16xf32>
    %11 = arith.addf %8, %10 : vector<8x16xf32>
    %c1 = arith.constant 1 : index
    %12 = memref.load %arg3[%c1] : memref<6xf32, #tpu.memory_space<smem>>
    %13 = vector.broadcast %12 : f32 to vector<8x16xf32>
    %14 = arith.mulf %13, %4 : vector<8x16xf32>
    %15 = arith.addf %11, %14 : vector<8x16xf32>
    %c2 = arith.constant 2 : index
    %16 = memref.load %arg3[%c2] : memref<6xf32, #tpu.memory_space<smem>>
    %17 = vector.broadcast %16 : f32 to vector<8x16xf32>
    %18 = arith.mulf %17, %5 : vector<8x16xf32>
    %19 = arith.addf %15, %18 : vector<8x16xf32>
    %cst = arith.constant 0.000000e+00 : f32
    %20 = vector.broadcast %cst : f32 to vector<8x16xf32>
    %21 = arith.maximumf %19, %20 : vector<8x16xf32>
    %c3 = arith.constant 3 : index
    %22 = memref.load %arg3[%c3] : memref<6xf32, #tpu.memory_space<smem>>
    %23 = vector.broadcast %22 : f32 to vector<8x16xf32>
    %24 = arith.mulf %23, %3 : vector<8x16xf32>
    %c1_5 = arith.constant 1 : index
    %25 = memref.load %arg4[%c1_5] : memref<2xf32, #tpu.memory_space<smem>>
    %26 = vector.broadcast %25 : f32 to vector<8x16xf32>
    %27 = arith.addf %24, %26 : vector<8x16xf32>
    %c4 = arith.constant 4 : index
    %28 = memref.load %arg3[%c4] : memref<6xf32, #tpu.memory_space<smem>>
    %29 = vector.broadcast %28 : f32 to vector<8x16xf32>
    %30 = arith.mulf %29, %4 : vector<8x16xf32>
    %31 = arith.addf %27, %30 : vector<8x16xf32>
    %c5 = arith.constant 5 : index
    %32 = memref.load %arg3[%c5] : memref<6xf32, #tpu.memory_space<smem>>
    %33 = vector.broadcast %32 : f32 to vector<8x16xf32>
    %34 = arith.mulf %33, %5 : vector<8x16xf32>
    %35 = arith.addf %31, %34 : vector<8x16xf32>
    %cst_6 = arith.constant 0.000000e+00 : f32
    %36 = vector.broadcast %cst_6 : f32 to vector<8x16xf32>
    %37 = arith.maximumf %35, %36 : vector<8x16xf32>
    %38 = vector.extract_strided_slice %21 {offsets = [0, 0], sizes = [8, 14], strides = [1, 1]} : vector<8x16xf32> to vector<8x14xf32>
    %39 = vector.extract_strided_slice %21 {offsets = [0, 1], sizes = [8, 14], strides = [1, 1]} : vector<8x16xf32> to vector<8x14xf32>
    %40 = vector.extract_strided_slice %21 {offsets = [0, 2], sizes = [8, 14], strides = [1, 1]} : vector<8x16xf32> to vector<8x14xf32>
    %41 = vector.extract_strided_slice %37 {offsets = [0, 0], sizes = [8, 14], strides = [1, 1]} : vector<8x16xf32> to vector<8x14xf32>
    %42 = vector.extract_strided_slice %37 {offsets = [0, 1], sizes = [8, 14], strides = [1, 1]} : vector<8x16xf32> to vector<8x14xf32>
    %43 = vector.extract_strided_slice %37 {offsets = [0, 2], sizes = [8, 14], strides = [1, 1]} : vector<8x16xf32> to vector<8x14xf32>
    %c0_7 = arith.constant 0 : index
    %44 = memref.load %arg5[%c0_7] : memref<24xf32, #tpu.memory_space<smem>>
    %45 = vector.broadcast %44 : f32 to vector<8x14xf32>
    %46 = arith.mulf %45, %38 : vector<8x14xf32>
    %c0_8 = arith.constant 0 : index
    %47 = memref.load %arg6[%c0_8] : memref<4xf32, #tpu.memory_space<smem>>
    %48 = vector.broadcast %47 : f32 to vector<8x14xf32>
    %49 = arith.addf %46, %48 : vector<8x14xf32>
    %c1_9 = arith.constant 1 : index
    %50 = memref.load %arg5[%c1_9] : memref<24xf32, #tpu.memory_space<smem>>
    %51 = vector.broadcast %50 : f32 to vector<8x14xf32>
    %52 = arith.mulf %51, %39 : vector<8x14xf32>
    %53 = arith.addf %49, %52 : vector<8x14xf32>
    %c2_10 = arith.constant 2 : index
    %54 = memref.load %arg5[%c2_10] : memref<24xf32, #tpu.memory_space<smem>>
    %55 = vector.broadcast %54 : f32 to vector<8x14xf32>
    %56 = arith.mulf %55, %40 : vector<8x14xf32>
    %57 = arith.addf %53, %56 : vector<8x14xf32>
    %c3_11 = arith.constant 3 : index
    %58 = memref.load %arg5[%c3_11] : memref<24xf32, #tpu.memory_space<smem>>
    %59 = vector.broadcast %58 : f32 to vector<8x14xf32>
    %60 = arith.mulf %59, %41 : vector<8x14xf32>
    %61 = arith.addf %57, %60 : vector<8x14xf32>
    %c4_12 = arith.constant 4 : index
    %62 = memref.load %arg5[%c4_12] : memref<24xf32, #tpu.memory_space<smem>>
    %63 = vector.broadcast %62 : f32 to vector<8x14xf32>
    %64 = arith.mulf %63, %42 : vector<8x14xf32>
    %65 = arith.addf %61, %64 : vector<8x14xf32>
    %c5_13 = arith.constant 5 : index
    %66 = memref.load %arg5[%c5_13] : memref<24xf32, #tpu.memory_space<smem>>
    %67 = vector.broadcast %66 : f32 to vector<8x14xf32>
    %68 = arith.mulf %67, %43 : vector<8x14xf32>
    %69 = arith.addf %65, %68 : vector<8x14xf32>
    %cst_14 = arith.constant 0.000000e+00 : f32
    %70 = vector.broadcast %cst_14 : f32 to vector<8x14xf32>
    %71 = arith.maximumf %69, %70 : vector<8x14xf32>
    %c6 = arith.constant 6 : index
    %72 = memref.load %arg5[%c6] : memref<24xf32, #tpu.memory_space<smem>>
    %73 = vector.broadcast %72 : f32 to vector<8x14xf32>
    %74 = arith.mulf %73, %38 : vector<8x14xf32>
    %c1_15 = arith.constant 1 : index
    %75 = memref.load %arg6[%c1_15] : memref<4xf32, #tpu.memory_space<smem>>
    %76 = vector.broadcast %75 : f32 to vector<8x14xf32>
    %77 = arith.addf %74, %76 : vector<8x14xf32>
    %c7 = arith.constant 7 : index
    %78 = memref.load %arg5[%c7] : memref<24xf32, #tpu.memory_space<smem>>
    %79 = vector.broadcast %78 : f32 to vector<8x14xf32>
    %80 = arith.mulf %79, %39 : vector<8x14xf32>
    %81 = arith.addf %77, %80 : vector<8x14xf32>
    %c8 = arith.constant 8 : index
    %82 = memref.load %arg5[%c8] : memref<24xf32, #tpu.memory_space<smem>>
    %83 = vector.broadcast %82 : f32 to vector<8x14xf32>
    %84 = arith.mulf %83, %40 : vector<8x14xf32>
    %85 = arith.addf %81, %84 : vector<8x14xf32>
    %c9 = arith.constant 9 : index
    %86 = memref.load %arg5[%c9] : memref<24xf32, #tpu.memory_space<smem>>
    %87 = vector.broadcast %86 : f32 to vector<8x14xf32>
    %88 = arith.mulf %87, %41 : vector<8x14xf32>
    %89 = arith.addf %85, %88 : vector<8x14xf32>
    %c10 = arith.constant 10 : index
    %90 = memref.load %arg5[%c10] : memref<24xf32, #tpu.memory_space<smem>>
    %91 = vector.broadcast %90 : f32 to vector<8x14xf32>
    %92 = arith.mulf %91, %42 : vector<8x14xf32>
    %93 = arith.addf %89, %92 : vector<8x14xf32>
    %c11 = arith.constant 11 : index
    %94 = memref.load %arg5[%c11] : memref<24xf32, #tpu.memory_space<smem>>
    %95 = vector.broadcast %94 : f32 to vector<8x14xf32>
    %96 = arith.mulf %95, %43 : vector<8x14xf32>
    %97 = arith.addf %93, %96 : vector<8x14xf32>
    %cst_16 = arith.constant 0.000000e+00 : f32
    %98 = vector.broadcast %cst_16 : f32 to vector<8x14xf32>
    %99 = arith.maximumf %97, %98 : vector<8x14xf32>
    %c12 = arith.constant 12 : index
    %100 = memref.load %arg5[%c12] : memref<24xf32, #tpu.memory_space<smem>>
    %101 = vector.broadcast %100 : f32 to vector<8x14xf32>
    %102 = arith.mulf %101, %38 : vector<8x14xf32>
    %c2_17 = arith.constant 2 : index
    %103 = memref.load %arg6[%c2_17] : memref<4xf32, #tpu.memory_space<smem>>
    %104 = vector.broadcast %103 : f32 to vector<8x14xf32>
    %105 = arith.addf %102, %104 : vector<8x14xf32>
    %c13 = arith.constant 13 : index
    %106 = memref.load %arg5[%c13] : memref<24xf32, #tpu.memory_space<smem>>
    %107 = vector.broadcast %106 : f32 to vector<8x14xf32>
    %108 = arith.mulf %107, %39 : vector<8x14xf32>
    %109 = arith.addf %105, %108 : vector<8x14xf32>
    %c14 = arith.constant 14 : index
    %110 = memref.load %arg5[%c14] : memref<24xf32, #tpu.memory_space<smem>>
    %111 = vector.broadcast %110 : f32 to vector<8x14xf32>
    %112 = arith.mulf %111, %40 : vector<8x14xf32>
    %113 = arith.addf %109, %112 : vector<8x14xf32>
    %c15 = arith.constant 15 : index
    %114 = memref.load %arg5[%c15] : memref<24xf32, #tpu.memory_space<smem>>
    %115 = vector.broadcast %114 : f32 to vector<8x14xf32>
    %116 = arith.mulf %115, %41 : vector<8x14xf32>
    %117 = arith.addf %113, %116 : vector<8x14xf32>
    %c16 = arith.constant 16 : index
    %118 = memref.load %arg5[%c16] : memref<24xf32, #tpu.memory_space<smem>>
    %119 = vector.broadcast %118 : f32 to vector<8x14xf32>
    %120 = arith.mulf %119, %42 : vector<8x14xf32>
    %121 = arith.addf %117, %120 : vector<8x14xf32>
    %c17 = arith.constant 17 : index
    %122 = memref.load %arg5[%c17] : memref<24xf32, #tpu.memory_space<smem>>
    %123 = vector.broadcast %122 : f32 to vector<8x14xf32>
    %124 = arith.mulf %123, %43 : vector<8x14xf32>
    %125 = arith.addf %121, %124 : vector<8x14xf32>
    %cst_18 = arith.constant 0.000000e+00 : f32
    %126 = vector.broadcast %cst_18 : f32 to vector<8x14xf32>
    %127 = arith.maximumf %125, %126 : vector<8x14xf32>
    %c18 = arith.constant 18 : index
    %128 = memref.load %arg5[%c18] : memref<24xf32, #tpu.memory_space<smem>>
    %129 = vector.broadcast %128 : f32 to vector<8x14xf32>
    %130 = arith.mulf %129, %38 : vector<8x14xf32>
    %c3_19 = arith.constant 3 : index
    %131 = memref.load %arg6[%c3_19] : memref<4xf32, #tpu.memory_space<smem>>
    %132 = vector.broadcast %131 : f32 to vector<8x14xf32>
    %133 = arith.addf %130, %132 : vector<8x14xf32>
    %c19 = arith.constant 19 : index
    %134 = memref.load %arg5[%c19] : memref<24xf32, #tpu.memory_space<smem>>
    %135 = vector.broadcast %134 : f32 to vector<8x14xf32>
    %136 = arith.mulf %135, %39 : vector<8x14xf32>
    %137 = arith.addf %133, %136 : vector<8x14xf32>
    %c20 = arith.constant 20 : index
    %138 = memref.load %arg5[%c20] : memref<24xf32, #tpu.memory_space<smem>>
    %139 = vector.broadcast %138 : f32 to vector<8x14xf32>
    %140 = arith.mulf %139, %40 : vector<8x14xf32>
    %141 = arith.addf %137, %140 : vector<8x14xf32>
    %c21 = arith.constant 21 : index
    %142 = memref.load %arg5[%c21] : memref<24xf32, #tpu.memory_space<smem>>
    %143 = vector.broadcast %142 : f32 to vector<8x14xf32>
    %144 = arith.mulf %143, %41 : vector<8x14xf32>
    %145 = arith.addf %141, %144 : vector<8x14xf32>
    %c22 = arith.constant 22 : index
    %146 = memref.load %arg5[%c22] : memref<24xf32, #tpu.memory_space<smem>>
    %147 = vector.broadcast %146 : f32 to vector<8x14xf32>
    %148 = arith.mulf %147, %42 : vector<8x14xf32>
    %149 = arith.addf %145, %148 : vector<8x14xf32>
    %c23 = arith.constant 23 : index
    %150 = memref.load %arg5[%c23] : memref<24xf32, #tpu.memory_space<smem>>
    %151 = vector.broadcast %150 : f32 to vector<8x14xf32>
    %152 = arith.mulf %151, %43 : vector<8x14xf32>
    %153 = arith.addf %149, %152 : vector<8x14xf32>
    %cst_20 = arith.constant 0.000000e+00 : f32
    %154 = vector.broadcast %cst_20 : f32 to vector<8x14xf32>
    %155 = arith.maximumf %153, %154 : vector<8x14xf32>
    %156 = vector.extract_strided_slice %71 {offsets = [0, 0], sizes = [8, 12], strides = [1, 1]} : vector<8x14xf32> to vector<8x12xf32>
    %157 = vector.extract_strided_slice %71 {offsets = [0, 1], sizes = [8, 12], strides = [1, 1]} : vector<8x14xf32> to vector<8x12xf32>
    %158 = vector.extract_strided_slice %71 {offsets = [0, 2], sizes = [8, 12], strides = [1, 1]} : vector<8x14xf32> to vector<8x12xf32>
    %159 = vector.extract_strided_slice %99 {offsets = [0, 0], sizes = [8, 12], strides = [1, 1]} : vector<8x14xf32> to vector<8x12xf32>
    %160 = vector.extract_strided_slice %99 {offsets = [0, 1], sizes = [8, 12], strides = [1, 1]} : vector<8x14xf32> to vector<8x12xf32>
    %161 = vector.extract_strided_slice %99 {offsets = [0, 2], sizes = [8, 12], strides = [1, 1]} : vector<8x14xf32> to vector<8x12xf32>
    %162 = vector.extract_strided_slice %127 {offsets = [0, 0], sizes = [8, 12], strides = [1, 1]} : vector<8x14xf32> to vector<8x12xf32>
    %163 = vector.extract_strided_slice %127 {offsets = [0, 1], sizes = [8, 12], strides = [1, 1]} : vector<8x14xf32> to vector<8x12xf32>
    %164 = vector.extract_strided_slice %127 {offsets = [0, 2], sizes = [8, 12], strides = [1, 1]} : vector<8x14xf32> to vector<8x12xf32>
    %165 = vector.extract_strided_slice %155 {offsets = [0, 0], sizes = [8, 12], strides = [1, 1]} : vector<8x14xf32> to vector<8x12xf32>
    %166 = vector.extract_strided_slice %155 {offsets = [0, 1], sizes = [8, 12], strides = [1, 1]} : vector<8x14xf32> to vector<8x12xf32>
    %167 = vector.extract_strided_slice %155 {offsets = [0, 2], sizes = [8, 12], strides = [1, 1]} : vector<8x14xf32> to vector<8x12xf32>
    %c0_21 = arith.constant 0 : index
    %168 = memref.load %arg7[%c0_21] : memref<96xf32, #tpu.memory_space<smem>>
    %169 = vector.broadcast %168 : f32 to vector<8x12xf32>
    %170 = arith.mulf %169, %156 : vector<8x12xf32>
    %c0_22 = arith.constant 0 : index
    %171 = memref.load %arg8[%c0_22] : memref<8xf32, #tpu.memory_space<smem>>
    %172 = vector.broadcast %171 : f32 to vector<8x12xf32>
    %173 = arith.addf %170, %172 : vector<8x12xf32>
    %c1_23 = arith.constant 1 : index
    %174 = memref.load %arg7[%c1_23] : memref<96xf32, #tpu.memory_space<smem>>
    %175 = vector.broadcast %174 : f32 to vector<8x12xf32>
    %176 = arith.mulf %175, %157 : vector<8x12xf32>
    %177 = arith.addf %173, %176 : vector<8x12xf32>
    %c2_24 = arith.constant 2 : index
    %178 = memref.load %arg7[%c2_24] : memref<96xf32, #tpu.memory_space<smem>>
    %179 = vector.broadcast %178 : f32 to vector<8x12xf32>
    %180 = arith.mulf %179, %158 : vector<8x12xf32>
    %181 = arith.addf %177, %180 : vector<8x12xf32>
    %c3_25 = arith.constant 3 : index
    %182 = memref.load %arg7[%c3_25] : memref<96xf32, #tpu.memory_space<smem>>
    %183 = vector.broadcast %182 : f32 to vector<8x12xf32>
    %184 = arith.mulf %183, %159 : vector<8x12xf32>
    %185 = arith.addf %181, %184 : vector<8x12xf32>
    %c4_26 = arith.constant 4 : index
    %186 = memref.load %arg7[%c4_26] : memref<96xf32, #tpu.memory_space<smem>>
    %187 = vector.broadcast %186 : f32 to vector<8x12xf32>
    %188 = arith.mulf %187, %160 : vector<8x12xf32>
    %189 = arith.addf %185, %188 : vector<8x12xf32>
    %c5_27 = arith.constant 5 : index
    %190 = memref.load %arg7[%c5_27] : memref<96xf32, #tpu.memory_space<smem>>
    %191 = vector.broadcast %190 : f32 to vector<8x12xf32>
    %192 = arith.mulf %191, %161 : vector<8x12xf32>
    %193 = arith.addf %189, %192 : vector<8x12xf32>
    %c6_28 = arith.constant 6 : index
    %194 = memref.load %arg7[%c6_28] : memref<96xf32, #tpu.memory_space<smem>>
    %195 = vector.broadcast %194 : f32 to vector<8x12xf32>
    %196 = arith.mulf %195, %162 : vector<8x12xf32>
    %197 = arith.addf %193, %196 : vector<8x12xf32>
    %c7_29 = arith.constant 7 : index
    %198 = memref.load %arg7[%c7_29] : memref<96xf32, #tpu.memory_space<smem>>
    %199 = vector.broadcast %198 : f32 to vector<8x12xf32>
    %200 = arith.mulf %199, %163 : vector<8x12xf32>
    %201 = arith.addf %197, %200 : vector<8x12xf32>
    %c8_30 = arith.constant 8 : index
    %202 = memref.load %arg7[%c8_30] : memref<96xf32, #tpu.memory_space<smem>>
    %203 = vector.broadcast %202 : f32 to vector<8x12xf32>
    %204 = arith.mulf %203, %164 : vector<8x12xf32>
    %205 = arith.addf %201, %204 : vector<8x12xf32>
    %c9_31 = arith.constant 9 : index
    %206 = memref.load %arg7[%c9_31] : memref<96xf32, #tpu.memory_space<smem>>
    %207 = vector.broadcast %206 : f32 to vector<8x12xf32>
    %208 = arith.mulf %207, %165 : vector<8x12xf32>
    %209 = arith.addf %205, %208 : vector<8x12xf32>
    %c10_32 = arith.constant 10 : index
    %210 = memref.load %arg7[%c10_32] : memref<96xf32, #tpu.memory_space<smem>>
    %211 = vector.broadcast %210 : f32 to vector<8x12xf32>
    %212 = arith.mulf %211, %166 : vector<8x12xf32>
    %213 = arith.addf %209, %212 : vector<8x12xf32>
    %c11_33 = arith.constant 11 : index
    %214 = memref.load %arg7[%c11_33] : memref<96xf32, #tpu.memory_space<smem>>
    %215 = vector.broadcast %214 : f32 to vector<8x12xf32>
    %216 = arith.mulf %215, %167 : vector<8x12xf32>
    %217 = arith.addf %213, %216 : vector<8x12xf32>
    %cst_34 = arith.constant 0.000000e+00 : f32
    %218 = vector.broadcast %cst_34 : f32 to vector<8x12xf32>
    %219 = arith.maximumf %217, %218 : vector<8x12xf32>
    %c12_35 = arith.constant 12 : index
    %220 = memref.load %arg7[%c12_35] : memref<96xf32, #tpu.memory_space<smem>>
    %221 = vector.broadcast %220 : f32 to vector<8x12xf32>
    %222 = arith.mulf %221, %156 : vector<8x12xf32>
    %c1_36 = arith.constant 1 : index
    %223 = memref.load %arg8[%c1_36] : memref<8xf32, #tpu.memory_space<smem>>
    %224 = vector.broadcast %223 : f32 to vector<8x12xf32>
    %225 = arith.addf %222, %224 : vector<8x12xf32>
    %c13_37 = arith.constant 13 : index
    %226 = memref.load %arg7[%c13_37] : memref<96xf32, #tpu.memory_space<smem>>
    %227 = vector.broadcast %226 : f32 to vector<8x12xf32>
    %228 = arith.mulf %227, %157 : vector<8x12xf32>
    %229 = arith.addf %225, %228 : vector<8x12xf32>
    %c14_38 = arith.constant 14 : index
    %230 = memref.load %arg7[%c14_38] : memref<96xf32, #tpu.memory_space<smem>>
    %231 = vector.broadcast %230 : f32 to vector<8x12xf32>
    %232 = arith.mulf %231, %158 : vector<8x12xf32>
    %233 = arith.addf %229, %232 : vector<8x12xf32>
    %c15_39 = arith.constant 15 : index
    %234 = memref.load %arg7[%c15_39] : memref<96xf32, #tpu.memory_space<smem>>
    %235 = vector.broadcast %234 : f32 to vector<8x12xf32>
    %236 = arith.mulf %235, %159 : vector<8x12xf32>
    %237 = arith.addf %233, %236 : vector<8x12xf32>
    %c16_40 = arith.constant 16 : index
    %238 = memref.load %arg7[%c16_40] : memref<96xf32, #tpu.memory_space<smem>>
    %239 = vector.broadcast %238 : f32 to vector<8x12xf32>
    %240 = arith.mulf %239, %160 : vector<8x12xf32>
    %241 = arith.addf %237, %240 : vector<8x12xf32>
    %c17_41 = arith.constant 17 : index
    %242 = memref.load %arg7[%c17_41] : memref<96xf32, #tpu.memory_space<smem>>
    %243 = vector.broadcast %242 : f32 to vector<8x12xf32>
    %244 = arith.mulf %243, %161 : vector<8x12xf32>
    %245 = arith.addf %241, %244 : vector<8x12xf32>
    %c18_42 = arith.constant 18 : index
    %246 = memref.load %arg7[%c18_42] : memref<96xf32, #tpu.memory_space<smem>>
    %247 = vector.broadcast %246 : f32 to vector<8x12xf32>
    %248 = arith.mulf %247, %162 : vector<8x12xf32>
    %249 = arith.addf %245, %248 : vector<8x12xf32>
    %c19_43 = arith.constant 19 : index
    %250 = memref.load %arg7[%c19_43] : memref<96xf32, #tpu.memory_space<smem>>
    %251 = vector.broadcast %250 : f32 to vector<8x12xf32>
    %252 = arith.mulf %251, %163 : vector<8x12xf32>
    %253 = arith.addf %249, %252 : vector<8x12xf32>
    %c20_44 = arith.constant 20 : index
    %254 = memref.load %arg7[%c20_44] : memref<96xf32, #tpu.memory_space<smem>>
    %255 = vector.broadcast %254 : f32 to vector<8x12xf32>
    %256 = arith.mulf %255, %164 : vector<8x12xf32>
    %257 = arith.addf %253, %256 : vector<8x12xf32>
    %c21_45 = arith.constant 21 : index
    %258 = memref.load %arg7[%c21_45] : memref<96xf32, #tpu.memory_space<smem>>
    %259 = vector.broadcast %258 : f32 to vector<8x12xf32>
    %260 = arith.mulf %259, %165 : vector<8x12xf32>
    %261 = arith.addf %257, %260 : vector<8x12xf32>
    %c22_46 = arith.constant 22 : index
    %262 = memref.load %arg7[%c22_46] : memref<96xf32, #tpu.memory_space<smem>>
    %263 = vector.broadcast %262 : f32 to vector<8x12xf32>
    %264 = arith.mulf %263, %166 : vector<8x12xf32>
    %265 = arith.addf %261, %264 : vector<8x12xf32>
    %c23_47 = arith.constant 23 : index
    %266 = memref.load %arg7[%c23_47] : memref<96xf32, #tpu.memory_space<smem>>
    %267 = vector.broadcast %266 : f32 to vector<8x12xf32>
    %268 = arith.mulf %267, %167 : vector<8x12xf32>
    %269 = arith.addf %265, %268 : vector<8x12xf32>
    %cst_48 = arith.constant 0.000000e+00 : f32
    %270 = vector.broadcast %cst_48 : f32 to vector<8x12xf32>
    %271 = arith.maximumf %269, %270 : vector<8x12xf32>
    %c24 = arith.constant 24 : index
    %272 = memref.load %arg7[%c24] : memref<96xf32, #tpu.memory_space<smem>>
    %273 = vector.broadcast %272 : f32 to vector<8x12xf32>
    %274 = arith.mulf %273, %156 : vector<8x12xf32>
    %c2_49 = arith.constant 2 : index
    %275 = memref.load %arg8[%c2_49] : memref<8xf32, #tpu.memory_space<smem>>
    %276 = vector.broadcast %275 : f32 to vector<8x12xf32>
    %277 = arith.addf %274, %276 : vector<8x12xf32>
    %c25 = arith.constant 25 : index
    %278 = memref.load %arg7[%c25] : memref<96xf32, #tpu.memory_space<smem>>
    %279 = vector.broadcast %278 : f32 to vector<8x12xf32>
    %280 = arith.mulf %279, %157 : vector<8x12xf32>
    %281 = arith.addf %277, %280 : vector<8x12xf32>
    %c26 = arith.constant 26 : index
    %282 = memref.load %arg7[%c26] : memref<96xf32, #tpu.memory_space<smem>>
    %283 = vector.broadcast %282 : f32 to vector<8x12xf32>
    %284 = arith.mulf %283, %158 : vector<8x12xf32>
    %285 = arith.addf %281, %284 : vector<8x12xf32>
    %c27 = arith.constant 27 : index
    %286 = memref.load %arg7[%c27] : memref<96xf32, #tpu.memory_space<smem>>
    %287 = vector.broadcast %286 : f32 to vector<8x12xf32>
    %288 = arith.mulf %287, %159 : vector<8x12xf32>
    %289 = arith.addf %285, %288 : vector<8x12xf32>
    %c28 = arith.constant 28 : index
    %290 = memref.load %arg7[%c28] : memref<96xf32, #tpu.memory_space<smem>>
    %291 = vector.broadcast %290 : f32 to vector<8x12xf32>
    %292 = arith.mulf %291, %160 : vector<8x12xf32>
    %293 = arith.addf %289, %292 : vector<8x12xf32>
    %c29 = arith.constant 29 : index
    %294 = memref.load %arg7[%c29] : memref<96xf32, #tpu.memory_space<smem>>
    %295 = vector.broadcast %294 : f32 to vector<8x12xf32>
    %296 = arith.mulf %295, %161 : vector<8x12xf32>
    %297 = arith.addf %293, %296 : vector<8x12xf32>
    %c30 = arith.constant 30 : index
    %298 = memref.load %arg7[%c30] : memref<96xf32, #tpu.memory_space<smem>>
    %299 = vector.broadcast %298 : f32 to vector<8x12xf32>
    %300 = arith.mulf %299, %162 : vector<8x12xf32>
    %301 = arith.addf %297, %300 : vector<8x12xf32>
    %c31 = arith.constant 31 : index
    %302 = memref.load %arg7[%c31] : memref<96xf32, #tpu.memory_space<smem>>
    %303 = vector.broadcast %302 : f32 to vector<8x12xf32>
    %304 = arith.mulf %303, %163 : vector<8x12xf32>
    %305 = arith.addf %301, %304 : vector<8x12xf32>
    %c32 = arith.constant 32 : index
    %306 = memref.load %arg7[%c32] : memref<96xf32, #tpu.memory_space<smem>>
    %307 = vector.broadcast %306 : f32 to vector<8x12xf32>
    %308 = arith.mulf %307, %164 : vector<8x12xf32>
    %309 = arith.addf %305, %308 : vector<8x12xf32>
    %c33 = arith.constant 33 : index
    %310 = memref.load %arg7[%c33] : memref<96xf32, #tpu.memory_space<smem>>
    %311 = vector.broadcast %310 : f32 to vector<8x12xf32>
    %312 = arith.mulf %311, %165 : vector<8x12xf32>
    %313 = arith.addf %309, %312 : vector<8x12xf32>
    %c34 = arith.constant 34 : index
    %314 = memref.load %arg7[%c34] : memref<96xf32, #tpu.memory_space<smem>>
    %315 = vector.broadcast %314 : f32 to vector<8x12xf32>
    %316 = arith.mulf %315, %166 : vector<8x12xf32>
    %317 = arith.addf %313, %316 : vector<8x12xf32>
    %c35 = arith.constant 35 : index
    %318 = memref.load %arg7[%c35] : memref<96xf32, #tpu.memory_space<smem>>
    %319 = vector.broadcast %318 : f32 to vector<8x12xf32>
    %320 = arith.mulf %319, %167 : vector<8x12xf32>
    %321 = arith.addf %317, %320 : vector<8x12xf32>
    %cst_50 = arith.constant 0.000000e+00 : f32
    %322 = vector.broadcast %cst_50 : f32 to vector<8x12xf32>
    %323 = arith.maximumf %321, %322 : vector<8x12xf32>
    %c36 = arith.constant 36 : index
    %324 = memref.load %arg7[%c36] : memref<96xf32, #tpu.memory_space<smem>>
    %325 = vector.broadcast %324 : f32 to vector<8x12xf32>
    %326 = arith.mulf %325, %156 : vector<8x12xf32>
    %c3_51 = arith.constant 3 : index
    %327 = memref.load %arg8[%c3_51] : memref<8xf32, #tpu.memory_space<smem>>
    %328 = vector.broadcast %327 : f32 to vector<8x12xf32>
    %329 = arith.addf %326, %328 : vector<8x12xf32>
    %c37 = arith.constant 37 : index
    %330 = memref.load %arg7[%c37] : memref<96xf32, #tpu.memory_space<smem>>
    %331 = vector.broadcast %330 : f32 to vector<8x12xf32>
    %332 = arith.mulf %331, %157 : vector<8x12xf32>
    %333 = arith.addf %329, %332 : vector<8x12xf32>
    %c38 = arith.constant 38 : index
    %334 = memref.load %arg7[%c38] : memref<96xf32, #tpu.memory_space<smem>>
    %335 = vector.broadcast %334 : f32 to vector<8x12xf32>
    %336 = arith.mulf %335, %158 : vector<8x12xf32>
    %337 = arith.addf %333, %336 : vector<8x12xf32>
    %c39 = arith.constant 39 : index
    %338 = memref.load %arg7[%c39] : memref<96xf32, #tpu.memory_space<smem>>
    %339 = vector.broadcast %338 : f32 to vector<8x12xf32>
    %340 = arith.mulf %339, %159 : vector<8x12xf32>
    %341 = arith.addf %337, %340 : vector<8x12xf32>
    %c40 = arith.constant 40 : index
    %342 = memref.load %arg7[%c40] : memref<96xf32, #tpu.memory_space<smem>>
    %343 = vector.broadcast %342 : f32 to vector<8x12xf32>
    %344 = arith.mulf %343, %160 : vector<8x12xf32>
    %345 = arith.addf %341, %344 : vector<8x12xf32>
    %c41 = arith.constant 41 : index
    %346 = memref.load %arg7[%c41] : memref<96xf32, #tpu.memory_space<smem>>
    %347 = vector.broadcast %346 : f32 to vector<8x12xf32>
    %348 = arith.mulf %347, %161 : vector<8x12xf32>
    %349 = arith.addf %345, %348 : vector<8x12xf32>
    %c42 = arith.constant 42 : index
    %350 = memref.load %arg7[%c42] : memref<96xf32, #tpu.memory_space<smem>>
    %351 = vector.broadcast %350 : f32 to vector<8x12xf32>
    %352 = arith.mulf %351, %162 : vector<8x12xf32>
    %353 = arith.addf %349, %352 : vector<8x12xf32>
    %c43 = arith.constant 43 : index
    %354 = memref.load %arg7[%c43] : memref<96xf32, #tpu.memory_space<smem>>
    %355 = vector.broadcast %354 : f32 to vector<8x12xf32>
    %356 = arith.mulf %355, %163 : vector<8x12xf32>
    %357 = arith.addf %353, %356 : vector<8x12xf32>
    %c44 = arith.constant 44 : index
    %358 = memref.load %arg7[%c44] : memref<96xf32, #tpu.memory_space<smem>>
    %359 = vector.broadcast %358 : f32 to vector<8x12xf32>
    %360 = arith.mulf %359, %164 : vector<8x12xf32>
    %361 = arith.addf %357, %360 : vector<8x12xf32>
    %c45 = arith.constant 45 : index
    %362 = memref.load %arg7[%c45] : memref<96xf32, #tpu.memory_space<smem>>
    %363 = vector.broadcast %362 : f32 to vector<8x12xf32>
    %364 = arith.mulf %363, %165 : vector<8x12xf32>
    %365 = arith.addf %361, %364 : vector<8x12xf32>
    %c46 = arith.constant 46 : index
    %366 = memref.load %arg7[%c46] : memref<96xf32, #tpu.memory_space<smem>>
    %367 = vector.broadcast %366 : f32 to vector<8x12xf32>
    %368 = arith.mulf %367, %166 : vector<8x12xf32>
    %369 = arith.addf %365, %368 : vector<8x12xf32>
    %c47 = arith.constant 47 : index
    %370 = memref.load %arg7[%c47] : memref<96xf32, #tpu.memory_space<smem>>
    %371 = vector.broadcast %370 : f32 to vector<8x12xf32>
    %372 = arith.mulf %371, %167 : vector<8x12xf32>
    %373 = arith.addf %369, %372 : vector<8x12xf32>
    %cst_52 = arith.constant 0.000000e+00 : f32
    %374 = vector.broadcast %cst_52 : f32 to vector<8x12xf32>
    %375 = arith.maximumf %373, %374 : vector<8x12xf32>
    %c48 = arith.constant 48 : index
    %376 = memref.load %arg7[%c48] : memref<96xf32, #tpu.memory_space<smem>>
    %377 = vector.broadcast %376 : f32 to vector<8x12xf32>
    %378 = arith.mulf %377, %156 : vector<8x12xf32>
    %c4_53 = arith.constant 4 : index
    %379 = memref.load %arg8[%c4_53] : memref<8xf32, #tpu.memory_space<smem>>
    %380 = vector.broadcast %379 : f32 to vector<8x12xf32>
    %381 = arith.addf %378, %380 : vector<8x12xf32>
    %c49 = arith.constant 49 : index
    %382 = memref.load %arg7[%c49] : memref<96xf32, #tpu.memory_space<smem>>
    %383 = vector.broadcast %382 : f32 to vector<8x12xf32>
    %384 = arith.mulf %383, %157 : vector<8x12xf32>
    %385 = arith.addf %381, %384 : vector<8x12xf32>
    %c50 = arith.constant 50 : index
    %386 = memref.load %arg7[%c50] : memref<96xf32, #tpu.memory_space<smem>>
    %387 = vector.broadcast %386 : f32 to vector<8x12xf32>
    %388 = arith.mulf %387, %158 : vector<8x12xf32>
    %389 = arith.addf %385, %388 : vector<8x12xf32>
    %c51 = arith.constant 51 : index
    %390 = memref.load %arg7[%c51] : memref<96xf32, #tpu.memory_space<smem>>
    %391 = vector.broadcast %390 : f32 to vector<8x12xf32>
    %392 = arith.mulf %391, %159 : vector<8x12xf32>
    %393 = arith.addf %389, %392 : vector<8x12xf32>
    %c52 = arith.constant 52 : index
    %394 = memref.load %arg7[%c52] : memref<96xf32, #tpu.memory_space<smem>>
    %395 = vector.broadcast %394 : f32 to vector<8x12xf32>
    %396 = arith.mulf %395, %160 : vector<8x12xf32>
    %397 = arith.addf %393, %396 : vector<8x12xf32>
    %c53 = arith.constant 53 : index
    %398 = memref.load %arg7[%c53] : memref<96xf32, #tpu.memory_space<smem>>
    %399 = vector.broadcast %398 : f32 to vector<8x12xf32>
    %400 = arith.mulf %399, %161 : vector<8x12xf32>
    %401 = arith.addf %397, %400 : vector<8x12xf32>
    %c54 = arith.constant 54 : index
    %402 = memref.load %arg7[%c54] : memref<96xf32, #tpu.memory_space<smem>>
    %403 = vector.broadcast %402 : f32 to vector<8x12xf32>
    %404 = arith.mulf %403, %162 : vector<8x12xf32>
    %405 = arith.addf %401, %404 : vector<8x12xf32>
    %c55 = arith.constant 55 : index
    %406 = memref.load %arg7[%c55] : memref<96xf32, #tpu.memory_space<smem>>
    %407 = vector.broadcast %406 : f32 to vector<8x12xf32>
    %408 = arith.mulf %407, %163 : vector<8x12xf32>
    %409 = arith.addf %405, %408 : vector<8x12xf32>
    %c56 = arith.constant 56 : index
    %410 = memref.load %arg7[%c56] : memref<96xf32, #tpu.memory_space<smem>>
    %411 = vector.broadcast %410 : f32 to vector<8x12xf32>
    %412 = arith.mulf %411, %164 : vector<8x12xf32>
    %413 = arith.addf %409, %412 : vector<8x12xf32>
    %c57 = arith.constant 57 : index
    %414 = memref.load %arg7[%c57] : memref<96xf32, #tpu.memory_space<smem>>
    %415 = vector.broadcast %414 : f32 to vector<8x12xf32>
    %416 = arith.mulf %415, %165 : vector<8x12xf32>
    %417 = arith.addf %413, %416 : vector<8x12xf32>
    %c58 = arith.constant 58 : index
    %418 = memref.load %arg7[%c58] : memref<96xf32, #tpu.memory_space<smem>>
    %419 = vector.broadcast %418 : f32 to vector<8x12xf32>
    %420 = arith.mulf %419, %166 : vector<8x12xf32>
    %421 = arith.addf %417, %420 : vector<8x12xf32>
    %c59 = arith.constant 59 : index
    %422 = memref.load %arg7[%c59] : memref<96xf32, #tpu.memory_space<smem>>
    %423 = vector.broadcast %422 : f32 to vector<8x12xf32>
    %424 = arith.mulf %423, %167 : vector<8x12xf32>
    %425 = arith.addf %421, %424 : vector<8x12xf32>
    %cst_54 = arith.constant 0.000000e+00 : f32
    %426 = vector.broadcast %cst_54 : f32 to vector<8x12xf32>
    %427 = arith.maximumf %425, %426 : vector<8x12xf32>
    %c60 = arith.constant 60 : index
    %428 = memref.load %arg7[%c60] : memref<96xf32, #tpu.memory_space<smem>>
    %429 = vector.broadcast %428 : f32 to vector<8x12xf32>
    %430 = arith.mulf %429, %156 : vector<8x12xf32>
    %c5_55 = arith.constant 5 : index
    %431 = memref.load %arg8[%c5_55] : memref<8xf32, #tpu.memory_space<smem>>
    %432 = vector.broadcast %431 : f32 to vector<8x12xf32>
    %433 = arith.addf %430, %432 : vector<8x12xf32>
    %c61 = arith.constant 61 : index
    %434 = memref.load %arg7[%c61] : memref<96xf32, #tpu.memory_space<smem>>
    %435 = vector.broadcast %434 : f32 to vector<8x12xf32>
    %436 = arith.mulf %435, %157 : vector<8x12xf32>
    %437 = arith.addf %433, %436 : vector<8x12xf32>
    %c62 = arith.constant 62 : index
    %438 = memref.load %arg7[%c62] : memref<96xf32, #tpu.memory_space<smem>>
    %439 = vector.broadcast %438 : f32 to vector<8x12xf32>
    %440 = arith.mulf %439, %158 : vector<8x12xf32>
    %441 = arith.addf %437, %440 : vector<8x12xf32>
    %c63 = arith.constant 63 : index
    %442 = memref.load %arg7[%c63] : memref<96xf32, #tpu.memory_space<smem>>
    %443 = vector.broadcast %442 : f32 to vector<8x12xf32>
    %444 = arith.mulf %443, %159 : vector<8x12xf32>
    %445 = arith.addf %441, %444 : vector<8x12xf32>
    %c64 = arith.constant 64 : index
    %446 = memref.load %arg7[%c64] : memref<96xf32, #tpu.memory_space<smem>>
    %447 = vector.broadcast %446 : f32 to vector<8x12xf32>
    %448 = arith.mulf %447, %160 : vector<8x12xf32>
    %449 = arith.addf %445, %448 : vector<8x12xf32>
    %c65 = arith.constant 65 : index
    %450 = memref.load %arg7[%c65] : memref<96xf32, #tpu.memory_space<smem>>
    %451 = vector.broadcast %450 : f32 to vector<8x12xf32>
    %452 = arith.mulf %451, %161 : vector<8x12xf32>
    %453 = arith.addf %449, %452 : vector<8x12xf32>
    %c66 = arith.constant 66 : index
    %454 = memref.load %arg7[%c66] : memref<96xf32, #tpu.memory_space<smem>>
    %455 = vector.broadcast %454 : f32 to vector<8x12xf32>
    %456 = arith.mulf %455, %162 : vector<8x12xf32>
    %457 = arith.addf %453, %456 : vector<8x12xf32>
    %c67 = arith.constant 67 : index
    %458 = memref.load %arg7[%c67] : memref<96xf32, #tpu.memory_space<smem>>
    %459 = vector.broadcast %458 : f32 to vector<8x12xf32>
    %460 = arith.mulf %459, %163 : vector<8x12xf32>
    %461 = arith.addf %457, %460 : vector<8x12xf32>
    %c68 = arith.constant 68 : index
    %462 = memref.load %arg7[%c68] : memref<96xf32, #tpu.memory_space<smem>>
    %463 = vector.broadcast %462 : f32 to vector<8x12xf32>
    %464 = arith.mulf %463, %164 : vector<8x12xf32>
    %465 = arith.addf %461, %464 : vector<8x12xf32>
    %c69 = arith.constant 69 : index
    %466 = memref.load %arg7[%c69] : memref<96xf32, #tpu.memory_space<smem>>
    %467 = vector.broadcast %466 : f32 to vector<8x12xf32>
    %468 = arith.mulf %467, %165 : vector<8x12xf32>
    %469 = arith.addf %465, %468 : vector<8x12xf32>
    %c70 = arith.constant 70 : index
    %470 = memref.load %arg7[%c70] : memref<96xf32, #tpu.memory_space<smem>>
    %471 = vector.broadcast %470 : f32 to vector<8x12xf32>
    %472 = arith.mulf %471, %166 : vector<8x12xf32>
    %473 = arith.addf %469, %472 : vector<8x12xf32>
    %c71 = arith.constant 71 : index
    %474 = memref.load %arg7[%c71] : memref<96xf32, #tpu.memory_space<smem>>
    %475 = vector.broadcast %474 : f32 to vector<8x12xf32>
    %476 = arith.mulf %475, %167 : vector<8x12xf32>
    %477 = arith.addf %473, %476 : vector<8x12xf32>
    %cst_56 = arith.constant 0.000000e+00 : f32
    %478 = vector.broadcast %cst_56 : f32 to vector<8x12xf32>
    %479 = arith.maximumf %477, %478 : vector<8x12xf32>
    %c72 = arith.constant 72 : index
    %480 = memref.load %arg7[%c72] : memref<96xf32, #tpu.memory_space<smem>>
    %481 = vector.broadcast %480 : f32 to vector<8x12xf32>
    %482 = arith.mulf %481, %156 : vector<8x12xf32>
    %c6_57 = arith.constant 6 : index
    %483 = memref.load %arg8[%c6_57] : memref<8xf32, #tpu.memory_space<smem>>
    %484 = vector.broadcast %483 : f32 to vector<8x12xf32>
    %485 = arith.addf %482, %484 : vector<8x12xf32>
    %c73 = arith.constant 73 : index
    %486 = memref.load %arg7[%c73] : memref<96xf32, #tpu.memory_space<smem>>
    %487 = vector.broadcast %486 : f32 to vector<8x12xf32>
    %488 = arith.mulf %487, %157 : vector<8x12xf32>
    %489 = arith.addf %485, %488 : vector<8x12xf32>
    %c74 = arith.constant 74 : index
    %490 = memref.load %arg7[%c74] : memref<96xf32, #tpu.memory_space<smem>>
    %491 = vector.broadcast %490 : f32 to vector<8x12xf32>
    %492 = arith.mulf %491, %158 : vector<8x12xf32>
    %493 = arith.addf %489, %492 : vector<8x12xf32>
    %c75 = arith.constant 75 : index
    %494 = memref.load %arg7[%c75] : memref<96xf32, #tpu.memory_space<smem>>
    %495 = vector.broadcast %494 : f32 to vector<8x12xf32>
    %496 = arith.mulf %495, %159 : vector<8x12xf32>
    %497 = arith.addf %493, %496 : vector<8x12xf32>
    %c76 = arith.constant 76 : index
    %498 = memref.load %arg7[%c76] : memref<96xf32, #tpu.memory_space<smem>>
    %499 = vector.broadcast %498 : f32 to vector<8x12xf32>
    %500 = arith.mulf %499, %160 : vector<8x12xf32>
    %501 = arith.addf %497, %500 : vector<8x12xf32>
    %c77 = arith.constant 77 : index
    %502 = memref.load %arg7[%c77] : memref<96xf32, #tpu.memory_space<smem>>
    %503 = vector.broadcast %502 : f32 to vector<8x12xf32>
    %504 = arith.mulf %503, %161 : vector<8x12xf32>
    %505 = arith.addf %501, %504 : vector<8x12xf32>
    %c78 = arith.constant 78 : index
    %506 = memref.load %arg7[%c78] : memref<96xf32, #tpu.memory_space<smem>>
    %507 = vector.broadcast %506 : f32 to vector<8x12xf32>
    %508 = arith.mulf %507, %162 : vector<8x12xf32>
    %509 = arith.addf %505, %508 : vector<8x12xf32>
    %c79 = arith.constant 79 : index
    %510 = memref.load %arg7[%c79] : memref<96xf32, #tpu.memory_space<smem>>
    %511 = vector.broadcast %510 : f32 to vector<8x12xf32>
    %512 = arith.mulf %511, %163 : vector<8x12xf32>
    %513 = arith.addf %509, %512 : vector<8x12xf32>
    %c80 = arith.constant 80 : index
    %514 = memref.load %arg7[%c80] : memref<96xf32, #tpu.memory_space<smem>>
    %515 = vector.broadcast %514 : f32 to vector<8x12xf32>
    %516 = arith.mulf %515, %164 : vector<8x12xf32>
    %517 = arith.addf %513, %516 : vector<8x12xf32>
    %c81 = arith.constant 81 : index
    %518 = memref.load %arg7[%c81] : memref<96xf32, #tpu.memory_space<smem>>
    %519 = vector.broadcast %518 : f32 to vector<8x12xf32>
    %520 = arith.mulf %519, %165 : vector<8x12xf32>
    %521 = arith.addf %517, %520 : vector<8x12xf32>
    %c82 = arith.constant 82 : index
    %522 = memref.load %arg7[%c82] : memref<96xf32, #tpu.memory_space<smem>>
    %523 = vector.broadcast %522 : f32 to vector<8x12xf32>
    %524 = arith.mulf %523, %166 : vector<8x12xf32>
    %525 = arith.addf %521, %524 : vector<8x12xf32>
    %c83 = arith.constant 83 : index
    %526 = memref.load %arg7[%c83] : memref<96xf32, #tpu.memory_space<smem>>
    %527 = vector.broadcast %526 : f32 to vector<8x12xf32>
    %528 = arith.mulf %527, %167 : vector<8x12xf32>
    %529 = arith.addf %525, %528 : vector<8x12xf32>
    %cst_58 = arith.constant 0.000000e+00 : f32
    %530 = vector.broadcast %cst_58 : f32 to vector<8x12xf32>
    %531 = arith.maximumf %529, %530 : vector<8x12xf32>
    %c84 = arith.constant 84 : index
    %532 = memref.load %arg7[%c84] : memref<96xf32, #tpu.memory_space<smem>>
    %533 = vector.broadcast %532 : f32 to vector<8x12xf32>
    %534 = arith.mulf %533, %156 : vector<8x12xf32>
    %c7_59 = arith.constant 7 : index
    %535 = memref.load %arg8[%c7_59] : memref<8xf32, #tpu.memory_space<smem>>
    %536 = vector.broadcast %535 : f32 to vector<8x12xf32>
    %537 = arith.addf %534, %536 : vector<8x12xf32>
    %c85 = arith.constant 85 : index
    %538 = memref.load %arg7[%c85] : memref<96xf32, #tpu.memory_space<smem>>
    %539 = vector.broadcast %538 : f32 to vector<8x12xf32>
    %540 = arith.mulf %539, %157 : vector<8x12xf32>
    %541 = arith.addf %537, %540 : vector<8x12xf32>
    %c86 = arith.constant 86 : index
    %542 = memref.load %arg7[%c86] : memref<96xf32, #tpu.memory_space<smem>>
    %543 = vector.broadcast %542 : f32 to vector<8x12xf32>
    %544 = arith.mulf %543, %158 : vector<8x12xf32>
    %545 = arith.addf %541, %544 : vector<8x12xf32>
    %c87 = arith.constant 87 : index
    %546 = memref.load %arg7[%c87] : memref<96xf32, #tpu.memory_space<smem>>
    %547 = vector.broadcast %546 : f32 to vector<8x12xf32>
    %548 = arith.mulf %547, %159 : vector<8x12xf32>
    %549 = arith.addf %545, %548 : vector<8x12xf32>
    %c88 = arith.constant 88 : index
    %550 = memref.load %arg7[%c88] : memref<96xf32, #tpu.memory_space<smem>>
    %551 = vector.broadcast %550 : f32 to vector<8x12xf32>
    %552 = arith.mulf %551, %160 : vector<8x12xf32>
    %553 = arith.addf %549, %552 : vector<8x12xf32>
    %c89 = arith.constant 89 : index
    %554 = memref.load %arg7[%c89] : memref<96xf32, #tpu.memory_space<smem>>
    %555 = vector.broadcast %554 : f32 to vector<8x12xf32>
    %556 = arith.mulf %555, %161 : vector<8x12xf32>
    %557 = arith.addf %553, %556 : vector<8x12xf32>
    %c90 = arith.constant 90 : index
    %558 = memref.load %arg7[%c90] : memref<96xf32, #tpu.memory_space<smem>>
    %559 = vector.broadcast %558 : f32 to vector<8x12xf32>
    %560 = arith.mulf %559, %162 : vector<8x12xf32>
    %561 = arith.addf %557, %560 : vector<8x12xf32>
    %c91 = arith.constant 91 : index
    %562 = memref.load %arg7[%c91] : memref<96xf32, #tpu.memory_space<smem>>
    %563 = vector.broadcast %562 : f32 to vector<8x12xf32>
    %564 = arith.mulf %563, %163 : vector<8x12xf32>
    %565 = arith.addf %561, %564 : vector<8x12xf32>
    %c92 = arith.constant 92 : index
    %566 = memref.load %arg7[%c92] : memref<96xf32, #tpu.memory_space<smem>>
    %567 = vector.broadcast %566 : f32 to vector<8x12xf32>
    %568 = arith.mulf %567, %164 : vector<8x12xf32>
    %569 = arith.addf %565, %568 : vector<8x12xf32>
    %c93 = arith.constant 93 : index
    %570 = memref.load %arg7[%c93] : memref<96xf32, #tpu.memory_space<smem>>
    %571 = vector.broadcast %570 : f32 to vector<8x12xf32>
    %572 = arith.mulf %571, %165 : vector<8x12xf32>
    %573 = arith.addf %569, %572 : vector<8x12xf32>
    %c94 = arith.constant 94 : index
    %574 = memref.load %arg7[%c94] : memref<96xf32, #tpu.memory_space<smem>>
    %575 = vector.broadcast %574 : f32 to vector<8x12xf32>
    %576 = arith.mulf %575, %166 : vector<8x12xf32>
    %577 = arith.addf %573, %576 : vector<8x12xf32>
    %c95 = arith.constant 95 : index
    %578 = memref.load %arg7[%c95] : memref<96xf32, #tpu.memory_space<smem>>
    %579 = vector.broadcast %578 : f32 to vector<8x12xf32>
    %580 = arith.mulf %579, %167 : vector<8x12xf32>
    %581 = arith.addf %577, %580 : vector<8x12xf32>
    %cst_60 = arith.constant 0.000000e+00 : f32
    %582 = vector.broadcast %cst_60 : f32 to vector<8x12xf32>
    %583 = arith.maximumf %581, %582 : vector<8x12xf32>
    %c0_61 = arith.constant 0 : index
    %c0_62 = arith.constant 0 : index
    %584 = vector.load %arg9[%c0_61, %c0_62] : memref<8x12xf32, #tpu.memory_space<vmem>>, vector<8x12xf32>
    %585 = vector.extract_strided_slice %584 {offsets = [0, 0], sizes = [1, 12], strides = [1, 1]} : vector<8x12xf32> to vector<1x12xf32>
    %586 = vector.shape_cast %585 : vector<1x12xf32> to vector<12xf32>
    %587 = vector.shape_cast %586 : vector<12xf32> to vector<1x12xf32>
    %588 = vector.broadcast %587 : vector<1x12xf32> to vector<8x12xf32>
    %589 = arith.mulf %219, %588 : vector<8x12xf32>
    %590 = vector.extract_strided_slice %584 {offsets = [1, 0], sizes = [1, 12], strides = [1, 1]} : vector<8x12xf32> to vector<1x12xf32>
    %591 = vector.shape_cast %590 : vector<1x12xf32> to vector<12xf32>
    %592 = vector.shape_cast %591 : vector<12xf32> to vector<1x12xf32>
    %593 = vector.broadcast %592 : vector<1x12xf32> to vector<8x12xf32>
    %594 = arith.mulf %271, %593 : vector<8x12xf32>
    %595 = arith.addf %589, %594 : vector<8x12xf32>
    %596 = vector.extract_strided_slice %584 {offsets = [2, 0], sizes = [1, 12], strides = [1, 1]} : vector<8x12xf32> to vector<1x12xf32>
    %597 = vector.shape_cast %596 : vector<1x12xf32> to vector<12xf32>
    %598 = vector.shape_cast %597 : vector<12xf32> to vector<1x12xf32>
    %599 = vector.broadcast %598 : vector<1x12xf32> to vector<8x12xf32>
    %600 = arith.mulf %323, %599 : vector<8x12xf32>
    %601 = arith.addf %595, %600 : vector<8x12xf32>
    %602 = vector.extract_strided_slice %584 {offsets = [3, 0], sizes = [1, 12], strides = [1, 1]} : vector<8x12xf32> to vector<1x12xf32>
    %603 = vector.shape_cast %602 : vector<1x12xf32> to vector<12xf32>
    %604 = vector.shape_cast %603 : vector<12xf32> to vector<1x12xf32>
    %605 = vector.broadcast %604 : vector<1x12xf32> to vector<8x12xf32>
    %606 = arith.mulf %375, %605 : vector<8x12xf32>
    %607 = arith.addf %601, %606 : vector<8x12xf32>
    %608 = vector.extract_strided_slice %584 {offsets = [4, 0], sizes = [1, 12], strides = [1, 1]} : vector<8x12xf32> to vector<1x12xf32>
    %609 = vector.shape_cast %608 : vector<1x12xf32> to vector<12xf32>
    %610 = vector.shape_cast %609 : vector<12xf32> to vector<1x12xf32>
    %611 = vector.broadcast %610 : vector<1x12xf32> to vector<8x12xf32>
    %612 = arith.mulf %427, %611 : vector<8x12xf32>
    %613 = arith.addf %607, %612 : vector<8x12xf32>
    %614 = vector.extract_strided_slice %584 {offsets = [5, 0], sizes = [1, 12], strides = [1, 1]} : vector<8x12xf32> to vector<1x12xf32>
    %615 = vector.shape_cast %614 : vector<1x12xf32> to vector<12xf32>
    %616 = vector.shape_cast %615 : vector<12xf32> to vector<1x12xf32>
    %617 = vector.broadcast %616 : vector<1x12xf32> to vector<8x12xf32>
    %618 = arith.mulf %479, %617 : vector<8x12xf32>
    %619 = arith.addf %613, %618 : vector<8x12xf32>
    %620 = vector.extract_strided_slice %584 {offsets = [6, 0], sizes = [1, 12], strides = [1, 1]} : vector<8x12xf32> to vector<1x12xf32>
    %621 = vector.shape_cast %620 : vector<1x12xf32> to vector<12xf32>
    %622 = vector.shape_cast %621 : vector<12xf32> to vector<1x12xf32>
    %623 = vector.broadcast %622 : vector<1x12xf32> to vector<8x12xf32>
    %624 = arith.mulf %531, %623 : vector<8x12xf32>
    %625 = arith.addf %619, %624 : vector<8x12xf32>
    %626 = vector.extract_strided_slice %584 {offsets = [7, 0], sizes = [1, 12], strides = [1, 1]} : vector<8x12xf32> to vector<1x12xf32>
    %627 = vector.shape_cast %626 : vector<1x12xf32> to vector<12xf32>
    %628 = vector.shape_cast %627 : vector<12xf32> to vector<1x12xf32>
    %629 = vector.broadcast %628 : vector<1x12xf32> to vector<8x12xf32>
    %630 = arith.mulf %583, %629 : vector<8x12xf32>
    %631 = arith.addf %625, %630 : vector<8x12xf32>
    %cst_63 = arith.constant dense<0.000000e+00> : vector<8xf32>
    %632 = vector.multi_reduction <add>, %631, %cst_63 [1] : vector<8x12xf32> to vector<8xf32>
    %c0_64 = arith.constant 0 : index
    %633 = memref.load %arg10[%c0_64] : memref<1xf32, #tpu.memory_space<smem>>
    %634 = vector.broadcast %633 : f32 to vector<8xf32>
    %635 = arith.addf %632, %634 : vector<8xf32>
    %636 = vector.shape_cast %635 : vector<8xf32> to vector<1x8xf32>
    %c0_65 = arith.constant 0 : index
    %c0_66 = arith.constant 0 : index
    %637 = vector.load %arg11[%c0_65, %c0_66] : memref<1x8xf32, #tpu.memory_space<vmem>>, vector<1x8xf32>
    tpu.vector_store %arg11[%c0_65, %c0_66], %636 {strides = array<i32>} : memref<1x8xf32, #tpu.memory_space<vmem>>, vector<1x8xf32>,
    return
  }
  func.func @transform_0(%arg0: i32) -> (i32, i32) {
    %c0_i32 = arith.constant 0 : i32
    %c0_i32_0 = arith.constant 0 : i32
    return %arg0, %c0_i32 : i32, i32
  }
  func.func @transform_1(%arg0: i32) -> (i32, i32) {
    %c0_i32 = arith.constant 0 : i32
    %c0_i32_0 = arith.constant 0 : i32
    return %arg0, %c0_i32 : i32, i32
  }
  func.func @transform_2(%arg0: i32) -> i32 {
    %c0_i32 = arith.constant 0 : i32
    %c0_i32_0 = arith.constant 0 : i32
    return %c0_i32 : i32
  }
  func.func @transform_3(%arg0: i32) -> i32 {
    %c0_i32 = arith.constant 0 : i32
    %c0_i32_0 = arith.constant 0 : i32
    return %c0_i32 : i32
  }
  func.func @transform_4(%arg0: i32) -> i32 {
    %c0_i32 = arith.constant 0 : i32
    %c0_i32_0 = arith.constant 0 : i32
    return %c0_i32 : i32
  }
  func.func @transform_5(%arg0: i32) -> i32 {
    %c0_i32 = arith.constant 0 : i32
    %c0_i32_0 = arith.constant 0 : i32
    return %c0_i32 : i32
  }
  func.func @transform_6(%arg0: i32) -> i32 {
    %c0_i32 = arith.constant 0 : i32
    %c0_i32_0 = arith.constant 0 : i32
    return %c0_i32 : i32
  }
  func.func @transform_7(%arg0: i32) -> i32 {
    %c0_i32 = arith.constant 0 : i32
    %c0_i32_0 = arith.constant 0 : i32
    return %c0_i32 : i32
  }
  func.func @transform_8(%arg0: i32) -> (i32, i32) {
    %c0_i32 = arith.constant 0 : i32
    %c0_i32_0 = arith.constant 0 : i32
    %c0_i32_1 = arith.constant 0 : i32
    return %c0_i32, %c0_i32_0 : i32, i32
  }
  func.func @transform_9(%arg0: i32) -> i32 {
    %c0_i32 = arith.constant 0 : i32
    %c0_i32_0 = arith.constant 0 : i32
    return %c0_i32 : i32
  }
  func.func @transform_10(%arg0: i32) -> (i32, i32) {
    %c0_i32 = arith.constant 0 : i32
    %c0_i32_0 = arith.constant 0 : i32
    return %c0_i32, %arg0 : i32, i32
  }
}

</mosaic_0001>

<bundles_post_ra>
// kernel: tpu_custom_call.1
= control target key start
LH: loop header
LB: loop body
LE: loop exit
PB: predicated region body
PF: predicated region fallthrough
CT: control target
= control target key end

     0   :  { %16 = vsyncpa [#allocation4], 0  ;;  %s1858_s0 = inlined_call_operand.hbm [shape: f32[8,10], index: 0, kind: input, shape index: {}]   ;;  %s1859_s1 = inlined_call_operand.hbm [shape: f32[8,8], index: 1, kind: input, shape index: {}]   ;;  %s1860_s2 = inlined_call_operand.vmem [shape: f32[6], index: 2, kind: input, shape index: {}]   ;;  %s1861_s3 = inlined_call_operand.vmem [shape: f32[2], index: 3, kind: input, shape index: {}]   ;;  %s1862_s4 = inlined_call_operand.vmem [shape: f32[24], index: 4, kind: input, shape index: {}]   ;;  %s1863_s5 = inlined_call_operand.vmem [shape: f32[4], index: 5, kind: input, shape index: {}]   ;;  %s1864_s6 = inlined_call_operand.vmem [shape: f32[96], index: 6, kind: input, shape index: {}]   ;;  %s1865_s7 = inlined_call_operand.vmem [shape: f32[8], index: 7, kind: input, shape index: {}]   ;;  %s1866_s8 = inlined_call_operand.vmem [shape: f32[8,12], index: 8, kind: input, shape index: {}]   ;;  %s1867_s9 = inlined_call_operand.<no memory space> [shape: f32[1], index: 9, kind: input, shape index: {}]   ;;  %s1868_s10 = inlined_call_operand.hbm [shape: f32[1,8], index: 10, kind: output, shape index: {}]  }
   0x1   :  { %17 = vsyncpa [#allocation8], 0 }
   0x2   :  { %18 = vsyncpa [#allocation6], 0 }
   0x3   :  { %19 = vsyncpa [#allocation11], 0 }
   0x4   :  { %20 = vsyncpa [#allocation14], 0 }
   0x5   :  { %21 = vsyncpa [#allocation17], 0  ;;  %s59_s15 = sshll.u32 %s1861_s3, 4  ;;  %s60_s15 = int_to_ptr.vmem [resolvable:$true] %s59_s15 }
   0x6   :  { %22 = vsyncpa [#allocation5], 0  ;;  %s79_s18 = sshll.u32 %s1863_s5, 4  ;;  %s1253_s19 = scalar_lea.vmem %s60_s15, 16  ;;  %s80_s18 = int_to_ptr.vmem [resolvable:$true] %s79_s18 }
   0x7   :  { %p1254_p0 = scmp.ne.s32.totalorder %s60_s15, %s1253_s19  ;;  %p1258_p1 = scmp.lt.s32.totalorder %s60_s15, %s60_s15 }
   0x8   :  { %p1259_p2 = scmp.lt.s32.totalorder %s1253_s19, %s1253_s19 }
   0xa   :  { %p1260_p3 = por %p1259_p2, %p1258_p1 }
   0xc   :  { %p1261_p4 = pnand %p1260_p3, %p1254_p0 }
   0xe   :  { %1264 = shalt.err (!%p1261_p4)
}
   0xf   :  { %s1399_s20 = smov [#allocation10]   ;;  %s1265_s21 = scalar_lea.vmem %s80_s18, 16 }
  0x10   :  { %62 = dma.vmem_to_smem %s60_s15, 16, %s1399_s20, [#allocation11]  }
  0x11   :  { %p1266_p5 = scmp.ne.s32.totalorder %s80_s18, %s1265_s21  ;;  %p1270_p6 = scmp.lt.s32.totalorder %s80_s18, %s80_s18 }
  0x12   :  { %p1271_p7 = scmp.lt.s32.totalorder %s1265_s21, %s1265_s21 }
  0x14   :  { %p1272_p8 = por %p1271_p7, %p1270_p6 }
  0x16   :  { %p1273_p9 = pnand %p1272_p8, %p1266_p5 }
  0x18   :  { %1276 = shalt.err (!%p1273_p9)
}
  0x19   :  { %s1400_s3 = smov [#allocation13]   ;;  %s1401_s5 = smov [#allocation3]  }
  0x1a   :  { %82 = dma.vmem_to_smem %s80_s18, 16, %s1400_s3, [#allocation14]  }
  0x1b   :  { %s29_s22 = sshll.u32 %s1401_s5, 4  ;;  %s1402_s23 = smov [#allocation7]   ;;  %s30_s22 = int_to_ptr.vmem [resolvable:$true] %s29_s22 }
  0x1c   :  { %s39_s24 = sshll.u32 %s1402_s23, 4  ;;  %s1285_s25 = scalar_lea.vmem %s30_s22, 128  ;;  %s40_s24 = int_to_ptr.vmem [resolvable:$true] %s39_s24 }
  0x1d   :  { %p1286_p10 = scmp.ne.s32.totalorder %s30_s22, %s1285_s25  ;;  %p1290_p11 = scmp.lt.s32.totalorder %s30_s22, %s30_s22 }
  0x1e   :  { %p1291_p12 = scmp.lt.s32.totalorder %s1285_s25, %s1285_s25 }
  0x20   :  { %p1292_p13 = por %p1291_p12, %p1290_p11 }
  0x22   :  { %p1293_p0 = pnand %p1292_p13, %p1286_p10 }
  0x24   :  { %1296 = shalt.err (!%p1293_p0)
}
  0x25   :  { %32 = dma.hbm_to_vmem [thread:$0]  %s1858_s0, 128, %s30_s22, [#allocation4]  }
  0x26   :  { %s1305_s28 = scalar_lea.vmem %s40_s24, 128  ;;  %p1310_p2 = scmp.lt.s32.totalorder %s40_s24, %s40_s24 }
  0x27   :  { %p1306_p1 = scmp.ne.s32.totalorder %s40_s24, %s1305_s28  ;;  %p1311_p3 = scmp.lt.s32.totalorder %s1305_s28, %s1305_s28 }
  0x29   :  { %p1312_p4 = por %p1311_p3, %p1310_p2 }
  0x2b   :  { %p1313_p5 = pnand %p1312_p4, %p1306_p1 }
  0x2d   :  { %1316 = shalt.err (!%p1313_p5)
}
  0x2e   :  { %42 = dma.hbm_to_vmem [thread:$0]  %s1859_s1, 128, %s40_s24, [#allocation8]  }
  0x2f   :  { %s49_s13 = sshll.u32 %s1860_s2, 4  ;;  %s69_s0 = sshll.u32 %s1862_s4, 4  ;;  %s50_s13 = int_to_ptr.vmem [resolvable:$true] %s49_s13  ;;  %s70_s0 = int_to_ptr.vmem [resolvable:$true] %s69_s0 }
  0x30   :  { %s1317_s16 = scalar_lea.vmem %s50_s13, 16  ;;  %p1322_p7 = scmp.lt.s32.totalorder %s50_s13, %s50_s13 }
  0x31   :  { %p1318_p6 = scmp.ne.s32.totalorder %s50_s13, %s1317_s16  ;;  %p1323_p8 = scmp.lt.s32.totalorder %s1317_s16, %s1317_s16 }
  0x33   :  { %p1324_p9 = por %p1323_p8, %p1322_p7 }
  0x35   :  { %p1325_p10 = pnand %p1324_p9, %p1318_p6 }
  0x37   :  { %1328 = shalt.err (!%p1325_p10)
}
  0x38   :  { %s1403_s17 = smov [#allocation9]   ;;  %s1329_s1 = scalar_lea.vmem %s70_s0, 16 }
  0x39   :  { %52 = dma.vmem_to_smem %s50_s13, 16, %s1403_s17, [#allocation6]  }
  0x3a   :  { %p1330_p11 = scmp.ne.s32.totalorder %s70_s0, %s1329_s1  ;;  %p1334_p12 = scmp.lt.s32.totalorder %s70_s0, %s70_s0 }
  0x3b   :  { %p1335_p13 = scmp.lt.s32.totalorder %s1329_s1, %s1329_s1 }
  0x3d   :  { %p1336_p0 = por %p1335_p13, %p1334_p12 }
  0x3f   :  { %p1337_p1 = pnand %p1336_p0, %p1330_p11 }
  0x41   :  { %1340 = shalt.err (!%p1337_p1)
}
  0x42   :  { %s1404_s2 = smov [#allocation12]   ;;  %s89_s19 = sshll.u32 %s1864_s6, 4  ;;  %s90_s19 = int_to_ptr.vmem [resolvable:$true] %s89_s19 }
  0x43   :  { %72 = dma.vmem_to_smem %s70_s0, 16, %s1404_s2, [#allocation11]  }
  0x44   :  { %s99_s3 = sshll.u32 %s1865_s7, 4  ;;  %s1341_s5 = scalar_lea.vmem %s90_s19, 16  ;;  %s100_s3 = int_to_ptr.vmem [resolvable:$true] %s99_s3 }
  0x45   :  { %p1342_p2 = scmp.ne.s32.totalorder %s90_s19, %s1341_s5  ;;  %p1346_p3 = scmp.lt.s32.totalorder %s90_s19, %s90_s19 }
  0x46   :  { %p1347_p4 = scmp.lt.s32.totalorder %s1341_s5, %s1341_s5 }
  0x48   :  { %p1348_p5 = por %p1347_p4, %p1346_p3 }
  0x4a   :  { %p1349_p6 = pnand %p1348_p5, %p1342_p2 }
  0x4c   :  { %1352 = shalt.err (!%p1349_p6)
}
  0x4d   :  { %s1405_s22 = smov [#allocation15]   ;;  %s1353_s23 = scalar_lea.vmem %s100_s3, 16 }
  0x4e   :  { %92 = dma.vmem_to_smem %s90_s19, 16, %s1405_s22, [#allocation14]  }
  0x4f   :  { %p1354_p7 = scmp.ne.s32.totalorder %s100_s3, %s1353_s23  ;;  %p1358_p8 = scmp.lt.s32.totalorder %s100_s3, %s100_s3 }
  0x50   :  { %p1359_p9 = scmp.lt.s32.totalorder %s1353_s23, %s1353_s23 }
  0x52   :  { %p1360_p10 = por %p1359_p9, %p1358_p8 }
  0x54   :  { %p1361_p11 = pnand %p1360_p10, %p1354_p7 }
  0x56   :  { %1364 = shalt.err (!%p1361_p11)
}
  0x57   :  { %s1406_s6 = smov [#allocation16]  }
  0x58   :  { %102 = dma.vmem_to_smem %s100_s3, 16, %s1406_s6, [#allocation17]  }
  0x59   :  { %1385 = dma.done.wait [#allocation4], 128  }
  0x5a   :  { %1386 = vsyncadd [#allocation4], 4294967168 }
  0x5b   :  { %1387 = dma.done.wait [#allocation8], 128  }
  0x5c   :  { %1388 = vsyncadd [#allocation8], 4294967168 }
  0x5d   :  { %1389 = dma.done.wait [#allocation6], 16  }
  0x5e   :  { %1390 = vsyncadd [#allocation6], 4294967280 }
  0x5f   :  { %1391 = dma.done.wait [#allocation11], 32  }
  0x60   :  { %1392 = vsyncadd [#allocation11], 4294967264 }
  0x61   :  { %1393 = dma.done.wait [#allocation14], 32  }
  0x62   :  { %1394 = vsyncadd [#allocation14], 4294967264 }
  0x63   :  { %1395 = dma.done.wait [#allocation17], 16  }
  0x64   :  { %1396 = vsyncadd [#allocation17], 4294967280 }
  0x65   :  { %131 = sfence }
  0x66   :  { %v133_v0 = vld [vmem:[#allocation7] sm:$0xff]  ;;  %s1407_s7 = smov 10   ;;  %s1108_s24 = sld [smem:[#allocation9 + $0x2]]  ;;  %vm138_vm0 = vcmask 80896   ;;  %v132_v1 = vld [vmem:[#allocation3] sm:$0xff]  ;;  %vm1070_vm1 = vcmask 97280  }
  0x67   :  { %135 = vrot.lane.b32.xlu0 %v133_v0, %s1407_s7  ;;  %s1107_s25 = sld [smem:[#allocation9 + $0x1]]  ;;  %s1408_s28 = smov 126   ;;  %vm1085_vm2 = vcmask 57344  }
  0x68   :  { %s1111_s26 = sld [smem:[#allocation9 + $0x4]]  ;;  %s1409_s29 = smov 127  }
  0x69   :  { %s1112_s27 = sld [smem:[#allocation9 + $0x5]] }
  0x6a   :  { %s140_s30 = sld [smem:[#allocation9]] }
  0x6b   :  { %s143_s11 = sld [smem:[#allocation10]] }
  0x6c   :  { %v155_v2 = vstv %s1108_s24  ;;  %s1109_s12 = sld [smem:[#allocation9 + $0x3]] }
  0x6d   :  { %v147_v3 = vstv %s1107_s25  ;;  %s1110_s13 = sld [smem:[#allocation10 + $0x1]] }
  0x6e   :  { %v170_v8 = vstv %s1111_s26  ;;  %s1114_s14 = sld [smem:[#allocation12 + $0x2]] }
  0x6f   :  { %v178_v9 = vstv %s1112_s27  ;;  %s1113_s15 = sld [smem:[#allocation12 + $0x1]] }
  0x70   :  { %v141_v12 = vstv %s140_s30  ;;  %s1120_s0 = sld [smem:[#allocation12 + $0x7]] }
  0x71   :  { %v144_v14 = vstv %s143_s11  ;;  %s1116_s16 = sld [smem:[#allocation12 + $0x4]] }
  0x72   :  { %v164_v15 = vstv %s1109_s12  ;;  %s1121_s17 = sld [smem:[#allocation12 + $0x8]] }
  0x73   :  { %v167_v20 = vstv %s1110_s13  ;;  %s1117_s1 = sld [smem:[#allocation12 + $0x5]] }
  0x74   :  { %v201_v25 = vstv %s1114_s14  ;;  %s1127_s2 = sld [smem:[#allocation12 + $0xd]] }
  0x75   :  { %v193_v26 = vstv %s1113_s15  ;;  %s1123_s4 = sld [smem:[#allocation12 + $0xa]] }
  0x76   :  { %v236_v33 = vstv %s1120_s0  ;;  %s1128_s18 = sld [smem:[#allocation12 + $0xe]] }
  0x77   :  { %v213_v34 = vstv %s1116_s16  ;;  %s1124_s19 = sld [smem:[#allocation12 + $0xb]] }
  0x78   :  { %v244_v38 = vstv %s1121_s17  ;;  %s1134_s20 = sld [smem:[#allocation12 + $0x13]] }
  0x79   :  { %v221_v39 = vstv %s1117_s1  ;;  %s1130_s21 = sld [smem:[#allocation12 + $0x10]] }
  0x7a   :  { %v279_v42 = vstv %s1127_s2  ;;  %s1135_s3 = sld [smem:[#allocation12 + $0x14]] }
  0x7b   :  { %v256_v43 = vstv %s1123_s4  ;;  %s1131_s5 = sld [smem:[#allocation12 + $0x11]] }
  0x7c   :  { %v287_v46 = vstv %s1128_s18  ;;  %s1138_s22 = sld [smem:[#allocation12 + $0x17]] }
  0x7d   :  { %v264_v47 = vstv %s1124_s19  ;;  %s1137_s23 = sld [smem:[#allocation12 + $0x16]] }
  0x7e   :  { %v322_v50 = vstv %s1134_s20  ;;  %s186_s6 = sld [smem:[#allocation12]] }
  0x7f   :  { %v299_v51 = vstv %s1130_s21  ;;  %s189_s7 = sld [smem:[#allocation13]] }
  0x80   :  { %v330_v54 = vstv %s1135_s3  ;;  %s1118_s24 = sld [smem:[#allocation12 + $0x6]] }
  0x81   :  { %v307_v55 = vstv %s1131_s5  ;;  %s1115_s25 = sld [smem:[#allocation12 + $0x3]] }
  0x82   :  { %v350_v58 = vstv %s1138_s22  ;;  %s1119_s26 = sld [smem:[#allocation13 + $0x1]] }
  0x83   :  { %v342_v59 = vstv %s1137_s23  ;;  %s1531_s27 = sld [smem:[#allocation12 + $0xc]] }
  0x84   :  { %v187_v62 = vstv %s186_s6  ;;  %s1533_s30 = sld [smem:[#allocation12 + $0x9]] }
  0x85   :  { %v190_v0 = vstv %s189_s7  ;;  %s1535_s11 = sld [smem:[#allocation13 + $0x2]] }
  0x86   :  { %s1538_s12 = sld [smem:[#allocation15 + $0xd]] }
  0x87   :  { %s1540_s13 = sld [smem:[#allocation15 + $0x1]] }
  0x88   :  { %s1543_s14 = sld [smem:[#allocation12 + $0x12]] }
  0x89   :  { %s1545_s15 = sld [smem:[#allocation12 + $0xf]] }
  0x8a   :  { %s1547_s0 = sld [smem:[#allocation15 + $0xe]] }
  0x8b   :  { %s1551_s16 = sld [smem:[#allocation15 + $0x2]] }
  0x8c   :  { %s1553_s17 = sld [smem:[#allocation13 + $0x3]] }
  0x8d   :  { %s1557_s1 = sld [smem:[#allocation15 + $0x1a]] }
  0x8e   :  { %s1562_s2 = sld [smem:[#allocation15 + $0x19]] }
  0x8f   :  { %s1567_s4 = sld [smem:[#allocation12 + $0x15]] }
  0x90   :  { %s1572_s18 = sld [smem:[#allocation15 + $0x25]] }
  0x91   :  { %s1576_s19 = sld [smem:[#allocation15 + $0x4]] }
  0x92   :  { %s1584_s20 = sld [smem:[#allocation15 + $0x26]] }
  0x93   :  { %s1155_s21 = sld [smem:[#allocation15 + $0x10]] }
  0x94   :  { %s1191_s3 = sld [smem:[#allocation15 + $0x31]] }
  0x95   :  { %s1143_s5 = sld [smem:[#allocation15 + $0x5]] }
  0x96   :  { %s1168_s22 = sld [smem:[#allocation15 + $0x1c]] }
  0x97   :  { %s1156_s23 = sld [smem:[#allocation15 + $0x11]] }
  0x98   :  { %s1204_s6 = sld [smem:[#allocation15 + $0x3d]] }
  0x99   :  { %s1192_s7 = sld [smem:[#allocation15 + $0x32]] }
  0xd9   :  { %v136_v4 = vpop.permute.xlu0 %135 }
  0xda   :  { %v139_v5 = vsel %vm138_vm0, %v132_v1, %v136_v4  ;;  %v230_v1 = vstv %s1118_s24  ;;  %s1181_s24 = sld [smem:[#allocation15 + $0x28]] }
  0xdb   :  { %v156_v6 = vmul.f32 %v155_v2, %v139_v5  ;;  %v148_v7 = vmul.f32 %v147_v3, %v139_v5  ;;  %v171_v10 = vmul.f32 %v170_v8, %v139_v5  ;;  %v179_v11 = vmul.f32 %v178_v9, %v139_v5 }
  0xdc   :  { %v142_v13 = vmul.f32 %v141_v12, %v139_v5  ;;  %v165_v17 = vmul.f32 %v164_v15, %v139_v5  ;;  %v209_v5 = vstv %s1115_s25  ;;  %v233_v8 = vstv %s1119_s26  ;;  %s1169_s25 = sld [smem:[#allocation15 + $0x1d]] }
  0xdd   :  { %158 = vrot.lane.b32.xlu1 %v156_v6, %s1408_s28  ;;  %150 = vrot.lane.b32.xlu0 %v148_v7, %s1409_s29  ;;  %v273_v15 = vstv %s1531_s27  ;;  %s1217_s26 = sld [smem:[#allocation15 + $0x49]] }
  0xde   :  { %v145_v16 = vadd.f32 %v144_v14, %v142_v13  ;;  %v168_v23 = vadd.f32 %v167_v20, %v165_v17  ;;  %s1205_s27 = sld [smem:[#allocation15 + $0x3e]] }
  0xe1   :  { %173 = vrot.lane.b32.xlu1 %v171_v10, %s1409_s29  ;;  %181 = vrot.lane.b32.xlu0 %v179_v11, %s1408_s28 }
 0x14f   :  { %v159_v18 = vpop.permute.xlu1 %158  ;;  %v151_v19 = vpop.permute.xlu0 %150 }
 0x150   :  { %v153_v21 = vadd.f32 %v151_v19, %v145_v16  ;;  %v252_v16 = vstv %s1533_s30  ;;  %s1158_s30 = sld [smem:[#allocation15 + $0x13]] }
 0x152   :  { %v161_v22 = vadd.f32 %v159_v18, %v153_v21 }
 0x153   :  { %v174_v24 = vpop.permute.xlu1 %173  ;;  %v182_v29 = vpop.permute.xlu0 %181 }
 0x154   :  { %v1494_v27 = vmax.f32 %v161_v22, 0.0  ;;  %v176_v28 = vadd.f32 %v174_v24, %v168_v23 }
 0x156   :  { %v184_v30 = vadd.f32 %v182_v29, %v176_v28  ;;  %v202_v31 = vmul.f32 %v201_v25, %v1494_v27  ;;  %v194_v32 = vmul.f32 %v193_v26, %v1494_v27  ;;  %v237_v36 = vmul.f32 %v236_v33, %v1494_v27 }
 0x157   :  { %v245_v40 = vmul.f32 %v244_v38, %v1494_v27  ;;  %v280_v44 = vmul.f32 %v279_v42, %v1494_v27  ;;  %v288_v48 = vmul.f32 %v287_v46, %v1494_v27  ;;  %v323_v52 = vmul.f32 %v322_v50, %v1494_v27 }
 0x158   :  { %v1498_v35 = vmax.f32 %v184_v30, 0.0  ;;  %204 = vrot.lane.b32.xlu0 %v202_v31, %s1408_s28  ;;  %196 = vrot.lane.b32.xlu1 %v194_v32, %s1409_s29  ;;  %v331_v56 = vmul.f32 %v330_v54, %v1494_v27  ;;  %v188_v63 = vmul.f32 %v187_v62, %v1494_v27  ;;  %v231_v7 = vmul.f32 %v230_v1, %v1494_v27 }
 0x159   :  { %v274_v23 = vmul.f32 %v273_v15, %v1494_v27  ;;  %v276_v25 = vstv %s1535_s11  ;;  %v448_v26 = vstv %s1538_s12  ;;  %v365_v28 = vstv %s1540_s13  ;;  %s1145_s11 = sld [smem:[#allocation15 + $0x7]] }
 0x15a   :  { %v214_v37 = vmul.f32 %v213_v34, %v1498_v35  ;;  %v222_v41 = vmul.f32 %v221_v39, %v1498_v35  ;;  %v257_v45 = vmul.f32 %v256_v43, %v1498_v35  ;;  %v265_v49 = vmul.f32 %v264_v47, %v1498_v35  ;;  %s1194_s12 = sld [smem:[#allocation15 + $0x34]] }
 0x15b   :  { %v300_v53 = vmul.f32 %v299_v51, %v1498_v35  ;;  %v308_v57 = vmul.f32 %v307_v55, %v1498_v35  ;;  %v351_v60 = vmul.f32 %v350_v58, %v1498_v35  ;;  %v343_v61 = vmul.f32 %v342_v59, %v1498_v35  ;;  %s1182_s13 = sld [smem:[#allocation15 + $0x29]] }
 0x15c   :  { %239 = vrot.lane.b32.xlu0 %v237_v36, %s1409_s29  ;;  %216 = vrot.lane.b32.xlu1 %v214_v37, %s1409_s29  ;;  %v191_v2 = vadd.f32 %v190_v0, %v188_v63  ;;  %v210_v10 = vmul.f32 %v209_v5, %v1498_v35  ;;  %v234_v13 = vadd.f32 %v233_v8, %v231_v7  ;;  %v316_v33 = vstv %s1543_s14  ;;  %s1230_s14 = sld [smem:[#allocation15 + $0x55]] }
 0x15d   :  { %v253_v24 = vmul.f32 %v252_v16, %v1498_v35  ;;  %v277_v34 = vadd.f32 %v276_v25, %v274_v23  ;;  %v295_v38 = vstv %s1545_s15  ;;  %v456_v39 = vstv %s1547_s0  ;;  %s1218_s15 = sld [smem:[#allocation15 + $0x4a]] }
 0x15e   :  { %v296_v46 = vmul.f32 %v295_v38, %v1498_v35  ;;  %v319_v51 = vstv %s1553_s17  ;;  %v385_v59 = vstv %s1576_s19  ;;  %v468_v5 = vstv %s1155_s21  ;;  %s1159_s0 = sld [smem:[#allocation15 + $0x14]] }
 0x15f   :  { %v559_v23 = vstv %s1169_s25  ;;  %s1195_s17 = sld [smem:[#allocation15 + $0x35]] }
 0x160   :  { %247 = vrot.lane.b32.xlu0 %v245_v40, %s1408_s28  ;;  %224 = vrot.lane.b32.xlu1 %v222_v41, %s1408_s28  ;;  %v373_v40 = vstv %s1551_s16  ;;  %s1146_s16 = sld [smem:[#allocation15 + $0x8]] }
 0x161   :  { %s1172_s19 = sld [smem:[#allocation15 + $0x20]] }
 0x162   :  { %s1208_s21 = sld [smem:[#allocation15 + $0x41]] }
 0x163   :  { %s1149_s25 = sld [smem:[#allocation15 + $0xb]] }
 0x164   :  { %282 = vrot.lane.b32.xlu0 %v280_v44, %s1409_s29  ;;  %259 = vrot.lane.b32.xlu1 %v257_v45, %s1409_s29  ;;  %v317_v45 = vmul.f32 %v316_v33, %v1494_v27 }
 0x168   :  { %290 = vrot.lane.b32.xlu0 %v288_v48, %s1408_s28  ;;  %267 = vrot.lane.b32.xlu1 %v265_v49, %s1408_s28 }
 0x16c   :  { %325 = vrot.lane.b32.xlu0 %v323_v52, %s1409_s29  ;;  %302 = vrot.lane.b32.xlu1 %v300_v53, %s1409_s29  ;;  %v539_v52 = vstv %s1557_s1  ;;  %v531_v53 = vstv %s1562_s2  ;;  %s1171_s1 = sld [smem:[#allocation15 + $0x1f]] }
 0x16d   :  { %s1231_s2 = sld [smem:[#allocation15 + $0x56]] }
 0x170   :  { %333 = vrot.lane.b32.xlu0 %v331_v56, %s1408_s28  ;;  %310 = vrot.lane.b32.xlu1 %v308_v57, %s1408_s28  ;;  %v320_v56 = vadd.f32 %v319_v51, %v317_v45  ;;  %v871_v45 = vstv %s1218_s15  ;;  %s1211_s15 = sld [smem:[#allocation15 + $0x44]] }
 0x174   :  { %353 = vrot.lane.b32.xlu0 %v351_v60, %s1408_s28  ;;  %345 = vrot.lane.b32.xlu1 %v343_v61, %s1409_s29  ;;  %v614_v60 = vstv %s1572_s18  ;;  %v338_v61 = vstv %s1567_s4  ;;  %s1207_s4 = sld [smem:[#allocation15 + $0x40]] }
 0x175   :  { %s1184_s18 = sld [smem:[#allocation15 + $0x2b]] }
 0x1ca   :  { %v205_v3 = vpop.permute.xlu0 %204  ;;  %v197_v4 = vpop.permute.xlu1 %196 }
 0x1cb   :  { %v199_v6 = vadd.f32 %v197_v4, %v191_v2  ;;  %v622_v4 = vstv %s1584_s20  ;;  %s1220_s20 = sld [smem:[#allocation15 + $0x4c]] }
 0x1cd   :  { %v207_v9 = vadd.f32 %v205_v3, %v199_v6  ;;  %v339_v3 = vmul.f32 %v338_v61, %v1498_v35 }
 0x1ce   :  { %v240_v11 = vpop.permute.xlu0 %239  ;;  %v217_v12 = vpop.permute.xlu1 %216 }
 0x1cf   :  { %v211_v14 = vadd.f32 %v210_v10, %v207_v9  ;;  %v242_v17 = vadd.f32 %v240_v11, %v234_v13  ;;  %v393_v9 = vstv %s1143_s5  ;;  %v697_v10 = vstv %s1191_s3  ;;  %s1161_s3 = sld [smem:[#allocation15 + $0x16]] }
 0x1d0   :  { %v476_v13 = vstv %s1156_s23  ;;  %s1148_s5 = sld [smem:[#allocation15 + $0xa]] }
 0x1d1   :  { %v219_v18 = vadd.f32 %v217_v12, %v211_v14  ;;  %v551_v12 = vstv %s1168_s22  ;;  %s1197_s22 = sld [smem:[#allocation15 + $0x37]] }
 0x1d2   :  { %v248_v19 = vpop.permute.xlu0 %247  ;;  %v225_v20 = vpop.permute.xlu1 %224  ;;  %s1185_s23 = sld [smem:[#allocation15 + $0x2c]] }
 0x1d3   :  { %v250_v21 = vadd.f32 %v248_v19, %v242_v17  ;;  %v227_v22 = vadd.f32 %v225_v20, %v219_v18  ;;  %v780_v17 = vstv %s1204_s6  ;;  %v705_v18 = vstv %s1192_s7  ;;  %s1233_s6 = sld [smem:[#allocation15 + $0x58]] }
 0x1d4   :  { %s1221_s7 = sld [smem:[#allocation15 + $0x4d]] }
 0x1d5   :  { %v1564_v29 = vmax.f32 %v227_v22, 0.0  ;;  %v254_v30 = vadd.f32 %v253_v24, %v250_v21  ;;  %v634_v22 = vstv %s1181_s24  ;;  %s1162_s24 = sld [smem:[#allocation15 + $0x17]] }
 0x1d6   :  { %v283_v31 = vpop.permute.xlu0 %282  ;;  %v260_v32 = vpop.permute.xlu1 %259 }
 0x1d7   :  { %v449_v36 = vmul.f32 %v448_v26, %v1564_v29  ;;  %v366_v37 = vmul.f32 %v365_v28, %v1564_v29  ;;  %v285_v41 = vadd.f32 %v283_v31, %v277_v34  ;;  %v262_v42 = vadd.f32 %v260_v32, %v254_v30 }
 0x1d8   :  { %v457_v49 = vmul.f32 %v456_v39, %v1564_v29  ;;  %v374_v50 = vmul.f32 %v373_v40, %v1564_v29  ;;  %v540_v57 = vmul.f32 %v539_v52, %v1564_v29  ;;  %v532_v58 = vmul.f32 %v531_v53, %v1564_v29 }
 0x1d9   :  { %451 = vrot.lane.b32.xlu0 %v449_v36, %s1409_s29  ;;  %368 = vrot.lane.b32.xlu1 %v366_v37, %s1409_s29  ;;  %v615_v2 = vmul.f32 %v614_v60, %v1564_v29  ;;  %v623_v7 = vmul.f32 %v622_v4, %v1564_v29  ;;  %v698_v11 = vmul.f32 %v697_v10, %v1564_v29  ;;  %v863_v30 = vstv %s1217_s26  ;;  %s1198_s26 = sld [smem:[#allocation15 + $0x38]] }
 0x1da   :  { %v291_v43 = vpop.permute.xlu0 %290  ;;  %v268_v44 = vpop.permute.xlu1 %267  ;;  %v781_v19 = vmul.f32 %v780_v17, %v1564_v29  ;;  %v706_v20 = vmul.f32 %v705_v18, %v1564_v29  ;;  %v788_v31 = vstv %s1205_s27  ;;  %v864_v33 = vmul.f32 %v863_v30, %v1564_v29  ;;  %s1174_s27 = sld [smem:[#allocation15 + $0x22]] }
 0x1db   :  { %v293_v47 = vadd.f32 %v291_v43, %v285_v41  ;;  %v270_v48 = vadd.f32 %v268_v44, %v262_v42  ;;  %v789_v34 = vmul.f32 %v788_v31, %v1564_v29  ;;  %v488_v36 = vstv %s1158_s30  ;;  %s1234_s30 = sld [smem:[#allocation15 + $0x59]] }
 0x1dc   :  { %v405_v37 = vstv %s1145_s11  ;;  %v717_v40 = vstv %s1194_s12  ;;  %v642_v41 = vstv %s1182_s13  ;;  %v946_v44 = vstv %s1230_s14  ;;  %s1210_s11 = sld [smem:[#allocation15 + $0x43]] }
 0x1dd   :  { %459 = vrot.lane.b32.xlu0 %v457_v49, %s1408_s28  ;;  %376 = vrot.lane.b32.xlu1 %v374_v50, %s1408_s28  ;;  %v297_v27 = vadd.f32 %v296_v46, %v293_v47  ;;  %v1591_v55 = vmax.f32 %v270_v48, 0.0  ;;  %v947_v46 = vmul.f32 %v946_v44, %v1564_v29  ;;  %v872_v47 = vmul.f32 %v871_v45, %v1564_v29  ;;  %s1187_s12 = sld [smem:[#allocation15 + $0x2e]] }
 0x1de   :  { %v326_v54 = vpop.permute.xlu0 %325  ;;  %v303_v14 = vpop.permute.xlu1 %302  ;;  %v496_v48 = vstv %s1159_s0  ;;  %v413_v49 = vstv %s1146_s16  ;;  %v725_v52 = vstv %s1195_s17  ;;  %v571_v53 = vstv %s1171_s1  ;;  %s1175_s13 = sld [smem:[#allocation15 + $0x23]] }
 0x1df   :  { %v328_v62 = vadd.f32 %v326_v54, %v320_v56  ;;  %v386_v1 = vmul.f32 %v385_v59, %v1591_v55  ;;  %v469_v8 = vmul.f32 %v468_v5, %v1591_v55  ;;  %v394_v35 = vmul.f32 %v393_v9, %v1591_v55  ;;  %s1223_s14 = sld [smem:[#allocation15 + $0x4f]] }
 0x1e0   :  { %v552_v15 = vmul.f32 %v551_v12, %v1591_v55  ;;  %v477_v16 = vmul.f32 %v476_v13, %v1591_v55  ;;  %v305_v24 = vadd.f32 %v303_v14, %v297_v27  ;;  %v635_v26 = vmul.f32 %v634_v22, %v1591_v55  ;;  %s1200_s0 = sld [smem:[#allocation15 + $0x3a]] }
 0x1e1   :  { %542 = vrot.lane.b32.xlu0 %v540_v57, %s1408_s28  ;;  %534 = vrot.lane.b32.xlu1 %v532_v58, %s1409_s29  ;;  %v560_v28 = vmul.f32 %v559_v23, %v1591_v55  ;;  %v718_v42 = vmul.f32 %v717_v40, %v1591_v55  ;;  %v643_v43 = vmul.f32 %v642_v41, %v1591_v55  ;;  %v954_v57 = vstv %s1231_s2  ;;  %s1188_s16 = sld [smem:[#allocation15 + $0x2f]] }
 0x1e2   :  { %v334_v63 = vpop.permute.xlu0 %333  ;;  %v311_v21 = vpop.permute.xlu1 %310  ;;  %v726_v27 = vmul.f32 %v725_v52, %v1591_v55  ;;  %v800_v58 = vstv %s1207_s4  ;;  %v955_v60 = vmul.f32 %v954_v57, %v1564_v29  ;;  %v883_v4 = vstv %s1220_s20  ;;  %s1693_s17 = sld [smem:[#allocation15 + $0x5b]] }
 0x1e3   :  { %v336_v0 = vadd.f32 %v334_v63, %v328_v62  ;;  %v313_v25 = vadd.f32 %v311_v21, %v305_v24  ;;  %v801_v61 = vmul.f32 %v800_v58, %v1591_v55  ;;  %v654_v62 = vstv %s1184_s18  ;;  %s1695_s1 = sld [smem:[#allocation15 + $0x50]] }
 0x1e4   :  { %v579_v63 = vstv %s1172_s19  ;;  %v808_v5 = vstv %s1208_s21  ;;  %v508_v9 = vstv %s1161_s3  ;;  %v425_v10 = vstv %s1148_s5  ;;  %s1699_s2 = sld [smem:[#allocation15 + $0x46]] }
 0x1e5   :  { %388 = vrot.lane.b32.xlu0 %v386_v1, %s1409_s29  ;;  %617 = vrot.lane.b32.xlu1 %v615_v2, %s1409_s29  ;;  %v1606_v6 = vadd.f32 %v339_v3, %v336_v0  ;;  %v1628_v32 = vmax.f32 %v313_v25, 0.0  ;;  %v737_v12 = vstv %s1197_s22  ;;  %v662_v13 = vstv %s1185_s23  ;;  %s1701_s4 = sld [smem:[#allocation15 + $0x3b]] }
 0x1e6   :  { %v346_v56 = vpop.permute.xlu1 %345  ;;  %v354_v0 = vpop.permute.xlu0 %353  ;;  %v891_v17 = vstv %s1221_s7  ;;  %v433_v21 = vstv %s1149_s25  ;;  %v745_v24 = vstv %s1198_s26  ;;  %v591_v25 = vstv %s1174_s27  ;;  %s1705_s18 = sld [smem:[#allocation15 + $0xc]] }
 0x1e7   :  { %v489_v38 = vmul.f32 %v488_v36, %v1628_v32  ;;  %v406_v39 = vmul.f32 %v405_v37, %v1628_v32  ;;  %v497_v50 = vmul.f32 %v496_v48, %v1628_v32  ;;  %v414_v51 = vmul.f32 %v413_v49, %v1628_v32  ;;  %s1707_s19 = sld [smem:[#allocation16 + $0x1]] }
 0x1e8   :  { %v572_v54 = vmul.f32 %v571_v53, %v1628_v32  ;;  %v348_v59 = vadd.f32 %v346_v56, %v1606_v6  ;;  %v655_v2 = vmul.f32 %v654_v62, %v1628_v32  ;;  %v580_v3 = vmul.f32 %v579_v63, %v1628_v32  ;;  %s358_s20 = sld [smem:[#allocation15]] }
 0x1e9   :  { %625 = vrot.lane.b32.xlu0 %v623_v7, %s1408_s28  ;;  %471 = vrot.lane.b32.xlu1 %v469_v8, %s1409_s29  ;;  %v884_v7 = vmul.f32 %v883_v4, %v1591_v55  ;;  %v809_v8 = vmul.f32 %v808_v5, %v1591_v55  ;;  %v738_v14 = vmul.f32 %v737_v12, %v1628_v32  ;;  %v974_v30 = vstv %s1234_s30  ;;  %s1711_s21 = sld [smem:[#allocation16]] }
 0x1ea   :  { %v356_v1 = vadd.f32 %v354_v0, %v348_v59  ;;  %v820_v31 = vstv %s1210_s11  ;;  %v674_v36 = vstv %s1187_s12  ;;  %v599_v37 = vstv %s1175_s13  ;;  %s1715_s3 = sld [smem:[#allocation15 + $0x47]] }
 0x1eb   :  { %v903_v40 = vstv %s1223_s14  ;;  %v828_v41 = vstv %s1211_s15  ;;  %v757_v44 = vstv %s1200_s0  ;;  %v682_v45 = vstv %s1188_s16  ;;  %s1717_s5 = sld [smem:[#allocation15 + $0x5c]] }
 0x1ec   :  { %v1663_v6 = vmax.f32 %v356_v1, 0.0  ;;  %s1721_s22 = sld [smem:[#allocation15 + $0x53]]  ;;  %v986_v48 = vstv %s1693_s17  ;;  %v911_v49 = vstv %s1695_s1  ;;  %v442_v52 = vstv %s1705_s18 }
 0x1ed   :  { %396 = vrot.lane.b32.xlu0 %v394_v35, %s1408_s28  ;;  %700 = vrot.lane.b32.xlu1 %v698_v11, %s1409_s29  ;;  %s1725_s23 = sld [smem:[#allocation15 + $0x52]]  ;;  %v443_v56 = vmul.f32 %v442_v52, %v1564_v29 }
 0x1ee   :  { %v509_v35 = vmul.f32 %v508_v9, %v1663_v6  ;;  %v426_v11 = vmul.f32 %v425_v10, %v1663_v6  ;;  %v434_v23 = vmul.f32 %v433_v21, %v1663_v6  ;;  %s1731_s7 = sld [smem:[#allocation16 + $0x2]]  ;;  %v359_v53 = vstv %s358_s20 }
 0x1ef   :  { %s1740_s25 = sld [smem:[#allocation15 + $0x3]]  ;;  %v360_v57 = vmul.f32 %v359_v53, %v1564_v29 }
 0x1f0   :  { %s1744_s26 = sld [smem:[#allocation15 + $0xf]]  ;;  %v848_v62 = vstv %s1715_s3 }
 0x1f1   :  { %554 = vrot.lane.b32.xlu0 %v552_v15, %s1409_s29  ;;  %479 = vrot.lane.b32.xlu1 %v477_v16, %s1408_s28  ;;  %v663_v15 = vmul.f32 %v662_v13, %v1628_v32  ;;  %v966_v16 = vstv %s1233_s6  ;;  %s1729_s6 = sld [smem:[#allocation15 + $0x18]]  ;;  %v994_v63 = vstv %s1717_s5  ;;  %v849_v4 = vmul.f32 %v848_v62, %v1663_v6 }
 0x1f2   :  { %v967_v18 = vmul.f32 %v966_v16, %v1591_v55  ;;  %s1748_s27 = sld [smem:[#allocation15 + $0x5e]]  ;;  %v995_v5 = vmul.f32 %v994_v63, %v1628_v32  ;;  %v931_v10 = vstv %s1721_s22 }
 0x1f3   :  { %s1754_s30 = sld [smem:[#allocation15 + $0x24]] }
 0x1f4   :  { %s1760_s11 = sld [smem:[#allocation16 + $0x3]] }
 0x1f5   :  { %783 = vrot.lane.b32.xlu0 %v781_v19, %s1409_s29  ;;  %708 = vrot.lane.b32.xlu1 %v706_v20, %s1408_s28  ;;  %v892_v19 = vmul.f32 %v891_v17, %v1591_v55  ;;  %v516_v20 = vstv %s1162_s24  ;;  %s1736_s24 = sld [smem:[#allocation15 + $0x5f]] }
 0x1f6   :  { %v517_v22 = vmul.f32 %v516_v20, %v1663_v6  ;;  %s1765_s12 = sld [smem:[#allocation15 + $0x1b]]  ;;  %v464_v12 = vstv %s1744_s26 }
 0x1f7   :  { %s1780_s13 = sld [smem:[#allocation15 + $0x30]] }
 0x1f8   :  { %v1006_v20 = vstv %s1748_s27  ;;  %s1786_s14 = sld [smem:[#allocation15 + $0x27]] }
 0x1f9   :  { %637 = vrot.lane.b32.xlu0 %v635_v26, %s1409_s29  ;;  %562 = vrot.lane.b32.xlu1 %v560_v28, %s1408_s28  ;;  %v746_v26 = vmul.f32 %v745_v24, %v1628_v32  ;;  %v592_v28 = vmul.f32 %v591_v25, %v1663_v6  ;;  %v608_v21 = vstv %s1754_s30  ;;  %v465_v25 = vmul.f32 %v464_v12, %v1591_v55  ;;  %s1190_s15 = sld [smem:[#allocation16 + $0x4]] }
 0x1fa   :  { %s1795_s0 = sld [smem:[#allocation15 + $0x6]] }
 0x1fb   :  { %s1202_s16 = sld [smem:[#allocation15 + $0x3c]] }
 0x1fc   :  { %s1157_s17 = sld [smem:[#allocation15 + $0x12]] }
 0x1fd   :  { %866 = vrot.lane.b32.xlu0 %v864_v33, %s1409_s29  ;;  %791 = vrot.lane.b32.xlu1 %v789_v34, %s1408_s28  ;;  %v975_v33 = vmul.f32 %v974_v30, %v1591_v55  ;;  %v821_v34 = vmul.f32 %v820_v31, %v1628_v32  ;;  %v609_v30 = vmul.f32 %v608_v21, %v1564_v29  ;;  %s1215_s1 = sld [smem:[#allocation15 + $0x48]] }
 0x1fe   :  { %s1206_s18 = sld [smem:[#allocation15 + $0x3f]] }
 0x1ff   :  { %s1219_s20 = sld [smem:[#allocation15 + $0x4b]] }
 0x200   :  { %s1160_s3 = sld [smem:[#allocation15 + $0x15]] }
 0x201   :  { %491 = vrot.lane.b32.xlu0 %v489_v38, %s1409_s29  ;;  %408 = vrot.lane.b32.xlu1 %v406_v39, %s1409_s29  ;;  %v675_v38 = vmul.f32 %v674_v36, %v1663_v6  ;;  %v600_v39 = vmul.f32 %v599_v37, %v1663_v6  ;;  %v1007_v37 = vmul.f32 %v1006_v20, %v1663_v6  ;;  %v774_v63 = vstv %s1202_s16  ;;  %s1147_s5 = sld [smem:[#allocation15 + $0x9]]  ;;  %s1410_s16 = smov [#allocation18]  }
 0x202   :  { %s1229_s22 = sld [smem:[#allocation16 + $0x7]] }
 0x203   :  { %s1222_s26 = sld [smem:[#allocation15 + $0x4e]] }
 0x204   :  { %s1199_s27 = sld [smem:[#allocation15 + $0x39]] }
 0x205   :  { %720 = vrot.lane.b32.xlu0 %v718_v42, %s1409_s29  ;;  %645 = vrot.lane.b32.xlu1 %v643_v43, %s1408_s28  ;;  %v904_v42 = vmul.f32 %v903_v40, %v1628_v32  ;;  %v829_v43 = vmul.f32 %v828_v41, %v1628_v32 }
 0x209   :  { %949 = vrot.lane.b32.xlu0 %v947_v46, %s1409_s29  ;;  %874 = vrot.lane.b32.xlu1 %v872_v47, %s1408_s28  ;;  %v758_v46 = vmul.f32 %v757_v44, %v1663_v6  ;;  %v683_v47 = vmul.f32 %v682_v45, %v1663_v6 }
 0x20d   :  { %499 = vrot.lane.b32.xlu0 %v497_v50, %s1408_s28  ;;  %416 = vrot.lane.b32.xlu1 %v414_v51, %s1408_s28  ;;  %v987_v50 = vmul.f32 %v986_v48, %v1628_v32  ;;  %v912_v51 = vmul.f32 %v911_v49, %v1628_v32 }
 0x211   :  { %728 = vrot.lane.b32.xlu0 %v726_v27, %s1408_s28  ;;  %574 = vrot.lane.b32.xlu1 %v572_v54, %s1409_s29  ;;  %v840_v27 = vstv %s1699_s2  ;;  %v765_v54 = vstv %s1701_s4  ;;  %s1170_s2 = sld [smem:[#allocation15 + $0x1e]] }
 0x212   :  { %v841_v58 = vmul.f32 %v840_v27, %v1663_v6  ;;  %v766_v59 = vmul.f32 %v765_v54, %v1663_v6  ;;  %v694_v27 = vstv %s1190_s15  ;;  %s1216_s4 = sld [smem:[#allocation16 + $0x6]] }
 0x215   :  { %957 = vrot.lane.b32.xlu0 %v955_v60, %s1408_s28  ;;  %803 = vrot.lane.b32.xlu1 %v801_v61, %s1409_s29  ;;  %v445_v60 = vstv %s1707_s19  ;;  %v362_v61 = vstv %s1711_s21  ;;  %s1183_s19 = sld [smem:[#allocation15 + $0x2a]] }
 0x216   :  { %v446_v0 = vadd.f32 %v445_v60, %v443_v56  ;;  %v363_v1 = vadd.f32 %v362_v61, %v360_v57  ;;  %s1228_s21 = sld [smem:[#allocation15 + $0x54]] }
 0x217   :  { %v567_v21 = vstv %s1170_s2 }
 0x219   :  { %657 = vrot.lane.b32.xlu0 %v655_v2, %s1409_s29  ;;  %582 = vrot.lane.b32.xlu1 %v580_v3, %s1408_s28 }
 0x21d   :  { %886 = vrot.lane.b32.xlu0 %v884_v7, %s1409_s29  ;;  %811 = vrot.lane.b32.xlu1 %v809_v8, %s1408_s28  ;;  %v525_v7 = vstv %s1729_s6  ;;  %s1232_s6 = sld [smem:[#allocation15 + $0x57]] }
 0x21e   :  { %v526_v13 = vmul.f32 %v525_v7, %v1564_v29 }
 0x221   :  { %511 = vrot.lane.b32.xlu0 %v509_v35, %s1409_s29  ;;  %428 = vrot.lane.b32.xlu1 %v426_v11, %s1409_s29  ;;  %v923_v35 = vstv %s1725_s23  ;;  %v381_v11 = vstv %s1740_s25  ;;  %s1196_s23 = sld [smem:[#allocation15 + $0x36]] }
 0x222   :  { %v382_v24 = vmul.f32 %v381_v11, %v1591_v55  ;;  %s1186_s25 = sld [smem:[#allocation15 + $0x2d]] }
 0x225   :  { %740 = vrot.lane.b32.xlu0 %v738_v14, %s1409_s29  ;;  %665 = vrot.lane.b32.xlu1 %v663_v15, %s1408_s28  ;;  %v528_v14 = vstv %s1731_s7  ;;  %v1014_v15 = vstv %s1736_s24  ;;  %s1173_s7 = sld [smem:[#allocation15 + $0x21]] }
 0x226   :  { %v1015_v36 = vmul.f32 %v1014_v15, %v1663_v6  ;;  %s1209_s24 = sld [smem:[#allocation15 + $0x42]] }
 0x229   :  { %969 = vrot.lane.b32.xlu0 %v967_v18, %s1409_s29  ;;  %894 = vrot.lane.b32.xlu1 %v892_v19, %s1408_s28  ;;  %v932_v18 = vmul.f32 %v931_v10, %v1663_v6  ;;  %v924_v19 = vmul.f32 %v923_v35, %v1663_v6 }
 0x22d   :  { %519 = vrot.lane.b32.xlu0 %v517_v22, %s1408_s28  ;;  %436 = vrot.lane.b32.xlu1 %v434_v23, %s1408_s28 }
 0x231   :  { %748 = vrot.lane.b32.xlu0 %v746_v26, %s1408_s28  ;;  %594 = vrot.lane.b32.xlu1 %v592_v28, %s1409_s29  ;;  %v529_v26 = vadd.f32 %v528_v14, %v526_v13 }
 0x235   :  { %977 = vrot.lane.b32.xlu0 %v975_v33, %s1408_s28  ;;  %823 = vrot.lane.b32.xlu1 %v821_v34, %s1409_s29 }
 0x239   :  { %677 = vrot.lane.b32.xlu0 %v675_v38, %s1409_s29  ;;  %602 = vrot.lane.b32.xlu1 %v600_v39, %s1408_s28  ;;  %v611_v38 = vstv %s1760_s11  ;;  %v547_v39 = vstv %s1765_s12  ;;  %s1235_s12 = sld [smem:[#allocation15 + $0x5a]] }
 0x23d   :  { %906 = vrot.lane.b32.xlu0 %v904_v42, %s1409_s29  ;;  %831 = vrot.lane.b32.xlu1 %v829_v43, %s1408_s28  ;;  %v612_v42 = vadd.f32 %v611_v38, %v609_v30  ;;  %v548_v43 = vmul.f32 %v547_v39, %v1591_v55 }
 0x241   :  { %760 = vrot.lane.b32.xlu0 %v758_v46, %s1409_s29  ;;  %685 = vrot.lane.b32.xlu1 %v683_v47, %s1408_s28  ;;  %v691_v46 = vstv %s1780_s13  ;;  %s1225_s13 = sld [smem:[#allocation15 + $0x51]] }
 0x245   :  { %989 = vrot.lane.b32.xlu0 %v987_v50, %s1409_s29  ;;  %914 = vrot.lane.b32.xlu1 %v912_v51, %s1408_s28  ;;  %v630_v50 = vstv %s1786_s14  ;;  %v692_v51 = vmul.f32 %v691_v46, %v1564_v29  ;;  %s1238_s14 = sld [smem:[#allocation15 + $0x5d]] }
 0x246   :  { %v631_v57 = vmul.f32 %v630_v50, %v1591_v55 }
 0x249   :  { %843 = vrot.lane.b32.xlu0 %v841_v58, %s1409_s29  ;;  %768 = vrot.lane.b32.xlu1 %v766_v59, %s1408_s28  ;;  %v401_v58 = vstv %s1795_s0  ;;  %v695_v59 = vadd.f32 %v694_v27, %v692_v51 }
 0x24b   :  { %v452_v2 = vpop.permute.xlu0 %451  ;;  %v369_v3 = vpop.permute.xlu1 %368 }
 0x24c   :  { %v454_v8 = vadd.f32 %v452_v2, %v446_v0  ;;  %v371_v9 = vadd.f32 %v369_v3, %v363_v1  ;;  %v402_v2 = vmul.f32 %v401_v58, %v1628_v32  ;;  %v484_v3 = vstv %s1157_s17  ;;  %s1093_s17 = sshll.u32 %s1410_s16, 4  ;;  %s1094_s17 = int_to_ptr.vmem [resolvable:$true] %s1093_s17 }
 0x24d   :  { %851 = vrot.lane.b32.xlu0 %v849_v4, %s1408_s28  ;;  %997 = vrot.lane.b32.xlu1 %v995_v5, %s1408_s28  ;;  %v775_v4 = vmul.f32 %v774_v63, %v1564_v29  ;;  %v485_v11 = vmul.f32 %v484_v3, %v1628_v32  ;;  %p1370_p13 = scmp.lt.s32.totalorder %s1094_s17, %s1094_s17 }
 0x24f   :  { %v460_v16 = vpop.permute.xlu0 %459  ;;  %v377_v17 = vpop.permute.xlu1 %376 }
 0x250   :  { %v462_v22 = vadd.f32 %v460_v16, %v454_v8  ;;  %v379_v23 = vadd.f32 %v377_v17, %v371_v9  ;;  %v857_v17 = vstv %s1215_s1 }
 0x251   :  { %934 = vrot.lane.b32.xlu0 %v932_v18, %s1408_s28  ;;  %926 = vrot.lane.b32.xlu1 %v924_v19, %s1409_s29 }
 0x252   :  { %v383_v28 = vadd.f32 %v382_v24, %v379_v23  ;;  %v466_v31 = vadd.f32 %v465_v25, %v462_v22  ;;  %v858_v22 = vmul.f32 %v857_v17, %v1564_v29 }
 0x253   :  { %v543_v33 = vpop.permute.xlu0 %542  ;;  %v535_v34 = vpop.permute.xlu1 %534 }
 0x254   :  { %v537_v40 = vadd.f32 %v535_v34, %v529_v26  ;;  %v860_v26 = vstv %s1216_s4 }
 0x255   :  { %1017 = vrot.lane.b32.xlu0 %v1015_v36, %s1408_s28  ;;  %1009 = vrot.lane.b32.xlu1 %v1007_v37, %s1409_s29  ;;  %s1203_s28 = sld [smem:[#allocation16 + $0x5]]  ;;  %v861_v34 = vadd.f32 %v860_v26, %v858_v22 }
 0x256   :  { %v545_v41 = vadd.f32 %v543_v33, %v537_v40  ;;  %s1193_s29 = sld [smem:[#allocation15 + $0x33]]  ;;  %v796_v33 = vstv %s1206_s18 }
 0x257   :  { %v389_v44 = vpop.permute.xlu0 %388  ;;  %v618_v45 = vpop.permute.xlu1 %617 }
 0x258   :  { %v391_v47 = vadd.f32 %v389_v44, %v383_v28  ;;  %v620_v48 = vadd.f32 %v618_v45, %v612_v42  ;;  %v549_v49 = vadd.f32 %v548_v43, %v545_v41  ;;  %v797_v41 = vmul.f32 %v796_v33, %v1591_v55 }
 0x25b   :  { %v626_v52 = vpop.permute.xlu0 %625  ;;  %v472_v53 = vpop.permute.xlu1 %471  ;;  %v777_v9 = vstv %s1203_s28  ;;  %s1365_s28 = scalar_lea.vmem %s1094_s17, 16 }
 0x25c   :  { %v628_v54 = vadd.f32 %v626_v52, %v620_v48  ;;  %v474_v56 = vadd.f32 %v472_v53, %v466_v31  ;;  %v713_v12 = vstv %s1193_s29  ;;  %v778_v13 = vadd.f32 %v777_v9, %v775_v4  ;;  %p1366_p12 = scmp.ne.s32.totalorder %s1094_s17, %s1365_s28  ;;  %s1369_s29 = scalar_lea.vmem %s1094_s17, 32 }
 0x25d   :  { %v714_v20 = vmul.f32 %v713_v12, %v1591_v55  ;;  %v568_v31 = vmul.f32 %v567_v21, %v1628_v32  ;;  %v879_v52 = vstv %s1219_s20  ;;  %v587_v21 = vstv %s1173_s7  ;;  %p1371_p0 = scmp.lt.s32.totalorder %s1369_s29, %s1365_s28 }
 0x25e   :  { %v632_v60 = vadd.f32 %v631_v57, %v628_v54  ;;  %v880_v58 = vmul.f32 %v879_v52, %v1591_v55 }
 0x25f   :  { %v397_v61 = vpop.permute.xlu0 %396  ;;  %v701_v62 = vpop.permute.xlu1 %700  ;;  %p1372_p1 = por %p1371_p0, %p1370_p13 }
 0x260   :  { %v399_v0 = vadd.f32 %v397_v61, %v391_v47  ;;  %v703_v1 = vadd.f32 %v701_v62, %v695_v59  ;;  %v650_v47 = vstv %s1183_s19  ;;  %v504_v59 = vstv %s1160_s3 }
 0x261   :  { %v651_v51 = vmul.f32 %v650_v47, %v1628_v32  ;;  %v505_v3 = vmul.f32 %v504_v59, %v1663_v6  ;;  %p1373_p2 = pnand %p1372_p1, %p1366_p12 }
 0x262   :  { %v403_v5 = vadd.f32 %v402_v2, %v399_v0 }
 0x263   :  { %v555_v7 = vpop.permute.xlu0 %554  ;;  %v480_v8 = vpop.permute.xlu1 %479 }
 0x264   :  { %v557_v10 = vadd.f32 %v555_v7, %v549_v49  ;;  %v482_v35 = vadd.f32 %v480_v8, %v474_v56  ;;  %v940_v56 = vstv %s1228_s21  ;;  %v733_v7 = vstv %s1196_s23 }
 0x265   :  { %v941_v62 = vmul.f32 %v940_v56, %v1564_v29  ;;  %v734_v29 = vmul.f32 %v733_v7, %v1628_v32 }
 0x266   :  { %v486_v14 = vadd.f32 %v485_v11, %v482_v35 }
 0x267   :  { %v784_v15 = vpop.permute.xlu0 %783  ;;  %v709_v16 = vpop.permute.xlu1 %708 }
 0x268   :  { %v786_v18 = vadd.f32 %v784_v15, %v778_v13  ;;  %v711_v19 = vadd.f32 %v709_v16, %v703_v1 }
 0x26a   :  { %v715_v23 = vadd.f32 %v714_v20, %v711_v19 }
 0x26b   :  { %v638_v24 = vpop.permute.xlu0 %637  ;;  %v563_v25 = vpop.permute.xlu1 %562 }
 0x26c   :  { %v640_v28 = vadd.f32 %v638_v24, %v632_v60  ;;  %v565_v30 = vadd.f32 %v563_v25, %v557_v10  ;;  %v421_v60 = vstv %s1147_s5 }
 0x26d   :  { %v422_v4 = vmul.f32 %v421_v60, %v1663_v6 }
 0x26e   :  { %v569_v36 = vadd.f32 %v568_v31, %v565_v30  ;;  %v816_v30 = vstv %s1209_s24 }
 0x26f   :  { %v867_v37 = vpop.permute.xlu0 %866  ;;  %v792_v38 = vpop.permute.xlu1 %791 }
 0x270   :  { %v869_v39 = vadd.f32 %v867_v37, %v861_v34  ;;  %v794_v40 = vadd.f32 %v792_v38, %v786_v18 }
 0x272   :  { %v798_v42 = vadd.f32 %v797_v41, %v794_v40 }
 0x273   :  { %v492_v43 = vpop.permute.xlu0 %491  ;;  %v409_v44 = vpop.permute.xlu1 %408 }
 0x274   :  { %v494_v45 = vadd.f32 %v492_v43, %v486_v14  ;;  %v411_v46 = vadd.f32 %v409_v44, %v403_v5  ;;  %v943_v5 = vstv %s1229_s22  ;;  %v962_v14 = vstv %s1232_s6 }
 0x275   :  { %v944_v12 = vadd.f32 %v943_v5, %v941_v62  ;;  %v963_v20 = vmul.f32 %v962_v14, %v1591_v55  ;;  %v670_v43 = vstv %s1186_s25 }
 0x277   :  { %v721_v48 = vpop.permute.xlu0 %720  ;;  %v646_v49 = vpop.permute.xlu1 %645 }
 0x278   :  { %v648_v50 = vadd.f32 %v646_v49, %v640_v28  ;;  %v723_v8 = vadd.f32 %v721_v48, %v715_v23  ;;  %v588_v28 = vmul.f32 %v587_v21, %v1663_v6  ;;  %v899_v49 = vstv %s1222_s26 }
 0x27a   :  { %v652_v53 = vadd.f32 %v651_v51, %v648_v50 }
 0x27b   :  { %v950_v27 = vpop.permute.xlu0 %949  ;;  %v875_v54 = vpop.permute.xlu1 %874 }
 0x27c   :  { %v877_v57 = vadd.f32 %v875_v54, %v869_v39  ;;  %v952_v15 = vadd.f32 %v950_v27, %v944_v12  ;;  %v817_v39 = vmul.f32 %v816_v30, %v1628_v32 }
 0x27e   :  { %v881_v61 = vadd.f32 %v880_v58, %v877_v57  ;;  %v1829_v58 = vld [vmem:[%s1866_s8] sm:$0xff]  ;;  %s1212_s8 = sld [smem:[#allocation15 + $0x45]] }
 0x27f   :  { %v500_v63 = vpop.permute.xlu0 %499  ;;  %v417_v0 = vpop.permute.xlu1 %416 }
 0x280   :  { %v502_v1 = vadd.f32 %v500_v63, %v494_v45  ;;  %v419_v2 = vadd.f32 %v417_v0, %v411_v46 }
 0x282   :  { %v506_v9 = vadd.f32 %v505_v3, %v502_v1  ;;  %v423_v10 = vadd.f32 %v422_v4, %v419_v2  ;;  %v753_v4 = vstv %s1199_s27 }
 0x283   :  { %v729_v35 = vpop.permute.xlu0 %728  ;;  %v575_v11 = vpop.permute.xlu1 %574 }
 0x284   :  { %v731_v13 = vadd.f32 %v729_v35, %v723_v8  ;;  %v577_v22 = vadd.f32 %v575_v11, %v569_v36  ;;  %v1023_v36 = vlaneseq }
 0x286   :  { %v735_v16 = vadd.f32 %v734_v29, %v731_v13  ;;  %v1820_v48 = vshrl.u32 %v1023_v36, 7 }
 0x287   :  { %v958_v17 = vpop.permute.xlu0 %957  ;;  %v804_v18 = vpop.permute.xlu1 %803 }
 0x288   :  { %v960_v19 = vadd.f32 %v958_v17, %v952_v15  ;;  %v806_v31 = vadd.f32 %v804_v18, %v798_v42  ;;  %v671_v42 = vmul.f32 %v670_v43, %v1663_v6  ;;  %v1030_v56 = vsub.s32 1, %v1820_v48 }
 0x289   :  { %v1025_v57 = vsub.s32 0, %v1820_v48  ;;  %v1036_v21 = vsub.s32 2, %v1820_v48 }
 0x28a   :  { %v964_v23 = vadd.f32 %v963_v20, %v960_v19  ;;  %v1031_v0 = vrot.slane %v1829_v58, %v1030_v56 }
 0x28b   :  { %v658_v24 = vpop.permute.xlu0 %657  ;;  %v583_v25 = vpop.permute.xlu1 %582  ;;  %v1026_v2 = vrot.slane %v1829_v58, %v1025_v57  ;;  %v1048_v57 = vsub.s32 4, %v1820_v48 }
 0x28c   :  { %v585_v26 = vadd.f32 %v583_v25, %v577_v22  ;;  %v660_v44 = vadd.f32 %v658_v24, %v652_v53  ;;  %v900_v53 = vmul.f32 %v899_v49, %v1628_v32  ;;  %v919_v49 = vstv %s1225_s13 }
 0x28e   :  { %v589_v33 = vadd.f32 %v588_v28, %v585_v26  ;;  %v1037_v28 = vrot.slane %v1829_v58, %v1036_v21 }
 0x28f   :  { %v887_v34 = vpop.permute.xlu0 %886  ;;  %v812_v37 = vpop.permute.xlu1 %811 }
 0x290   :  { %v814_v38 = vadd.f32 %v812_v37, %v806_v31  ;;  %v889_v50 = vadd.f32 %v887_v34, %v881_v61  ;;  %v836_v31 = vstv %s1212_s8 }
 0x291   :  { %v837_v43 = vmul.f32 %v836_v31, %v1663_v6 }
 0x292   :  { %v818_v40 = vadd.f32 %v817_v39, %v814_v38 }
 0x293   :  { %v512_v55 = vpop.permute.xlu0 %511  ;;  %v429_v41 = vpop.permute.xlu1 %428 }
 0x294   :  { %v514_v59 = vadd.f32 %v512_v55, %v506_v9  ;;  %v431_v60 = vadd.f32 %v429_v41, %v423_v10  ;;  %v754_v9 = vmul.f32 %v753_v4, %v1663_v6  ;;  %v982_v10 = vstv %s1235_s12 }
 0x295   :  { %v1042_v41 = vsub.s32 3, %v1820_v48 }
 0x297   :  { %v741_v45 = vpop.permute.xlu0 %740  ;;  %v666_v46 = vpop.permute.xlu1 %665 }
 0x298   :  { %v668_v47 = vadd.f32 %v666_v46, %v660_v44  ;;  %v743_v5 = vadd.f32 %v741_v45, %v735_v16  ;;  %v983_v16 = vmul.f32 %v982_v10, %v1628_v32 }
 0x29a   :  { %v672_v51 = vadd.f32 %v671_v42, %v668_v47  ;;  %v1043_v47 = vrot.slane %v1829_v58, %v1042_v41  ;;  %v1079_v41 = vand.u32 127, %v1023_v36 }
 0x29b   :  { %v970_v52 = vpop.permute.xlu0 %969  ;;  %v895_v27 = vpop.permute.xlu1 %894 }
 0x29c   :  { %v897_v54 = vadd.f32 %v895_v27, %v889_v50  ;;  %v972_v14 = vadd.f32 %v970_v52, %v964_v23 }
 0x29e   :  { %v901_v62 = vadd.f32 %v900_v53, %v897_v54  ;;  %v920_v53 = vmul.f32 %v919_v49, %v1663_v6 }
 0x29f   :  { %v520_v61 = vpop.permute.xlu0 %519  ;;  %v437_v63 = vpop.permute.xlu1 %436 }
 0x2a0   :  { %v522_v1 = vadd.f32 %v520_v61, %v514_v59  ;;  %v439_v3 = vadd.f32 %v437_v63, %v431_v60 }
 0x2a2   :  { %v523_v7 = vmax.f32 %v522_v1, 0.0  ;;  %v440_v8 = vmax.f32 %v439_v3, 0.0 }
 0x2a3   :  { %v749_v35 = vpop.permute.xlu0 %748  ;;  %v595_v11 = vpop.permute.xlu1 %594 }
 0x2a4   :  { %v1032_v12 = vmul.f32 %v1031_v0, %v523_v7  ;;  %v1027_v13 = vmul.f32 %v1026_v2, %v440_v8  ;;  %v751_v29 = vadd.f32 %v749_v35, %v743_v5  ;;  %v597_v22 = vadd.f32 %v595_v11, %v589_v33 }
 0x2a5   :  { %v1049_v0 = vrot.slane %v1829_v58, %v1048_v57  ;;  %v1054_v2 = vsub.s32 5, %v1820_v48 }
 0x2a6   :  { %v1033_v15 = vadd.f32 %v1032_v12, %v1027_v13  ;;  %v755_v17 = vadd.f32 %v754_v9, %v751_v29 }
 0x2a7   :  { %v978_v18 = vpop.permute.xlu0 %977  ;;  %v824_v19 = vpop.permute.xlu1 %823  ;;  %v1055_v12 = vrot.slane %v1829_v58, %v1054_v2 }
 0x2a8   :  { %v980_v20 = vadd.f32 %v978_v18, %v972_v14  ;;  %v826_v34 = vadd.f32 %v824_v19, %v818_v40  ;;  %v1060_v14 = vsub.s32 6, %v1820_v48 }
 0x2aa   :  { %v984_v24 = vadd.f32 %v983_v16, %v980_v20  ;;  %v1061_v16 = vrot.slane %v1829_v58, %v1060_v14 }
 0x2ab   :  { %v678_v25 = vpop.permute.xlu0 %677  ;;  %v603_v26 = vpop.permute.xlu1 %602 }
 0x2ac   :  { %v605_v30 = vadd.f32 %v603_v26, %v597_v22  ;;  %v680_v32 = vadd.f32 %v678_v25, %v672_v51 }
 0x2ae   :  { %v606_v23 = vmax.f32 %v605_v30, 0.0 }
 0x2af   :  { %v907_v37 = vpop.permute.xlu0 %906  ;;  %v832_v38 = vpop.permute.xlu1 %831 }
 0x2b0   :  { %v1038_v39 = vmul.f32 %v1037_v28, %v606_v23  ;;  %v834_v55 = vadd.f32 %v832_v38, %v826_v34  ;;  %v909_v40 = vadd.f32 %v907_v37, %v901_v62  ;;  %v1002_v62 = vstv %s1238_s14 }
 0x2b1   :  { %v1003_v35 = vmul.f32 %v1002_v62, %v1663_v6  ;;  %v1066_v6 = vsub.s32 7, %v1820_v48 }
 0x2b2   :  { %v1039_v33 = vadd.f32 %v1038_v39, %v1033_v15  ;;  %v838_v44 = vadd.f32 %v837_v43, %v834_v55  ;;  %v1075_v43 = vstv %s1867_s9 }
 0x2b3   :  { %v761_v45 = vpop.permute.xlu0 %760  ;;  %v686_v46 = vpop.permute.xlu1 %685  ;;  %v1067_v34 = vrot.slane %v1829_v58, %v1066_v6 }
 0x2b4   :  { %v688_v42 = vadd.f32 %v686_v46, %v680_v32  ;;  %v763_v51 = vadd.f32 %v761_v45, %v755_v17  ;;  %v1082_v32 = vsub.s32 %v1079_v41, %v1820_v48 }
 0x2b6   :  { %v689_v50 = vmax.f32 %v688_v42, 0.0 }
 0x2b7   :  { %v990_v52 = vpop.permute.xlu0 %989  ;;  %v915_v27 = vpop.permute.xlu1 %914 }
 0x2b8   :  { %v1044_v54 = vmul.f32 %v1043_v47, %v689_v50  ;;  %v917_v56 = vadd.f32 %v915_v27, %v909_v40  ;;  %v992_v3 = vadd.f32 %v990_v52, %v984_v24 }
 0x2ba   :  { %v1045_v59 = vadd.f32 %v1044_v54, %v1039_v33  ;;  %v921_v60 = vadd.f32 %v920_v53, %v917_v56 }
 0x2bb   :  { %v844_v61 = vpop.permute.xlu0 %843  ;;  %v769_v63 = vpop.permute.xlu1 %768 }
 0x2bc   :  { %v771_v1 = vadd.f32 %v769_v63, %v763_v51  ;;  %v846_v4 = vadd.f32 %v844_v61, %v838_v44 }
 0x2be   :  { %v772_v5 = vmax.f32 %v771_v1, 0.0 }
 0x2bf   :  { %v852_v7 = vpop.permute.xlu0 %851  ;;  %v998_v8 = vpop.permute.xlu1 %997 }
 0x2c0   :  { %v1050_v11 = vmul.f32 %v1049_v0, %v772_v5  ;;  %v854_v13 = vadd.f32 %v852_v7, %v846_v4  ;;  %v1000_v29 = vadd.f32 %v998_v8, %v992_v3 }
 0x2c2   :  { %v1051_v9 = vadd.f32 %v1050_v11, %v1045_v59  ;;  %v855_v10 = vmax.f32 %v854_v13, 0.0  ;;  %v1004_v15 = vadd.f32 %v1003_v35, %v1000_v29 }
 0x2c3   :  { %v935_v17 = vpop.permute.xlu0 %934  ;;  %v927_v18 = vpop.permute.xlu1 %926 }
 0x2c4   :  { %v1056_v19 = vmul.f32 %v1055_v12, %v855_v10  ;;  %v929_v20 = vadd.f32 %v927_v18, %v921_v60 }
 0x2c6   :  { %v1057_v21 = vadd.f32 %v1056_v19, %v1051_v9  ;;  %v937_v22 = vadd.f32 %v935_v17, %v929_v20 }
 0x2c7   :  { %v1010_v24 = vpop.permute.xlu1 %1009  ;;  %v1018_v28 = vpop.permute.xlu0 %1017 }
 0x2c8   :  { %v938_v25 = vmax.f32 %v937_v22, 0.0  ;;  %v1012_v26 = vadd.f32 %v1010_v24, %v1004_v15 }
 0x2ca   :  { %v1062_v30 = vmul.f32 %v1061_v16, %v938_v25  ;;  %v1020_v31 = vadd.f32 %v1018_v28, %v1012_v26 }
 0x2cc   :  { %v1021_v23 = vmax.f32 %v1020_v31, 0.0  ;;  %v1063_v37 = vadd.f32 %v1062_v30, %v1057_v21 }
 0x2ce   :  { %v1068_v38 = vmul.f32 %v1067_v34, %v1021_v23 }
 0x2d0   :  { %v1069_v39 = vadd.f32 %v1068_v38, %v1063_v37 }
 0x2d2   :  { %v1071_v55 = vsel %vm1070_vm1, %v1069_v39, 0.0 }
 0x2d3   :  { %1072 = vadd.xlane.f32.xlu1 %v1071_v55 }
 0x35c   :  { %v1073_v33 = vpop.xlane.xlu1 %1072 }
 0x35d   :  { %v1076_v44 = vadd.f32 %v1075_v43, %v1073_v33 }
 0x35f   :  { %v1083_v58 = vrot.slane %v1076_v44, %v1082_v32 }
 0x361   :  { %1086 = vst.msk [vmem:[#allocation18] sm:$0x1] %vm1085_vm2, %v1083_v58 }
 0x362   :  { %1376 = shalt.err (!%p1373_p2)
}
 0x363   :  { %1096 = dma.vmem_to_hbm [thread:$0]  %s1094_s17, 16, %s1868_s10, [#allocation5]  }
 0x364   :  { %1397 = dma.done.wait [#allocation5], 16  }
 0x365   :  { %1398 = vsyncadd [#allocation5], 4294967280 }
 0x366   :  { %1100 = vsyncpa [#allocation4], 1 }
 0x367   :  { %1101 = vsyncpa [#allocation8], 1 }
 0x368   :  { %1102 = vsyncpa [#allocation5], 1 }
 0x369   :  { %1103 = vsyncpa [#allocation6], 1 }
 0x36a   :  { %1104 = vsyncpa [#allocation11], 1 }
 0x36b   :  { %1105 = vsyncpa [#allocation14], 1 }
 0x36c   :  { %1106 = vsyncpa [#allocation17], 1 }

</bundles_post_ra>
